<compile_context>
chip_gen: v6e
topology: v6e:2x2x1
jax: 0.10.0
libtpu: 0.0.40
codegen_flags: <defaults>
</compile_context>

<pallas_src>
import functools

import jax
import jax.numpy as jnp
from jax.experimental import pallas as pl
from jax.experimental.pallas import tpu as pltpu


# ----------------------------------------------------------------------------
# Fused kernel
# ----------------------------------------------------------------------------
def _make_decoder_kernel(last, n_batch, hw, howo, eps):
    """Fused DecoderBlock body. All refs are full-array VMEM blocks."""

    def kernel(*refs):
        if last:
            x_ref, mup_ref, w1t_ref, g1_ref, b1_ref, o_ref = refs
            a = x_ref[...]                                      # (Cin, N*H*W)
        else:
            (x_ref, w3t_ref, g3_ref, b3_ref,
             mup_ref, w1t_ref, g1_ref, b1_ref, o_ref) = refs
            # conv_3x3 (no bias): one MXU matmul for the whole batch.
            c3 = jnp.dot(w3t_ref[...], x_ref[...],
                         preferred_element_type=jnp.float32)    # (Cin, N*H*W)
            # BatchNorm2d (training: batch stats, biased var) + ReLU, fused.
            cnt = jnp.float32(n_batch * hw)
            mean = jnp.sum(c3, axis=1, keepdims=True) / cnt           # (Cin,1)
            var = jnp.sum(c3 * c3, axis=1, keepdims=True) / cnt - mean * mean
            scale = g3_ref[...] * jax.lax.rsqrt(var + eps)
            shift = b3_ref[...] - mean * scale
            a = jnp.maximum(c3 * scale + shift, 0.0)            # (Cin, N*H*W)

        # Bilinear upsample (one kron matmul) + conv_1x1, per image; keep the
        # pre-BN results live in VMEM/vregs while batch stats are accumulated.
        mup = mup_ref[...]                                      # (H*W, Ho*Wo)
        w1t = w1t_ref[...]                                      # (Cout, Cin)
        c_out = w1t.shape[0]
        c1_per_image = []
        s1 = jnp.zeros((c_out, 1), jnp.float32)
        q1 = jnp.zeros((c_out, 1), jnp.float32)
        for n in range(n_batch):                                # static unroll
            a_n = a[:, n * hw:(n + 1) * hw]                     # (Cin, H*W)
            up = jnp.dot(a_n, mup, preferred_element_type=jnp.float32)
            c1 = jnp.dot(w1t, up, preferred_element_type=jnp.float32)
            c1_per_image.append(c1)                             # (Cout, Ho*Wo)
            s1 = s1 + jnp.sum(c1, axis=1, keepdims=True)
            q1 = q1 + jnp.sum(c1 * c1, axis=1, keepdims=True)

        # BatchNorm2d + ReLU on the 1x1-conv output, then lane-dense NCHW store.
        cnt1 = jnp.float32(n_batch * howo)
        mean1 = s1 / cnt1
        var1 = q1 / cnt1 - mean1 * mean1
        scale1 = g1_ref[...] * jax.lax.rsqrt(var1 + eps)
        shift1 = b1_ref[...] - mean1 * scale1
        for n in range(n_batch):
            o_ref[n, :, :] = jnp.maximum(c1_per_image[n] * scale1 + shift1, 0.0)

    return kernel


# ----------------------------------------------------------------------------
# Tiny host-side constant builders (all << 1.5 MB at these shapes)
# ----------------------------------------------------------------------------
def _interp_matrix(n_in, n_out):
    """(n_out, n_in) row-stochastic matrix: bilinear, align_corners=True."""
    if n_in == 1:
        return jnp.ones((n_out, 1), jnp.float32)
    src = jnp.arange(n_out, dtype=jnp.float32) * (n_in - 1) / (n_out - 1)
    i0 = jnp.clip(jnp.floor(src).astype(jnp.int32), 0, n_in - 1)
    i1 = jnp.clip(i0 + 1, 0, n_in - 1)
    frac = src - i0.astype(jnp.float32)
    oh0 = jax.nn.one_hot(i0, n_in, dtype=jnp.float32)
    oh1 = jax.nn.one_hot(i1, n_in, dtype=jnp.float32)
    return (1.0 - frac)[:, None] * oh0 + frac[:, None] * oh1


def _im2col_columns(x_nchw):
    """(N,Cin,H,W) -> (9*Cin, N*H*W) columns for the 3x3/stride1/pad1 conv.

    Row k = (3*dy+dx)*Cin + ci ; column = n*H*W + h*W + w  (channel-major).
    """
    n, c, h, w = x_nchw.shape
    xp = jnp.pad(x_nchw, ((0, 0), (0, 0), (1, 1), (1, 1)))
    taps = [xp[:, :, dy:dy + h, dx:dx + w]
            for dy in range(3) for dx in range(3)]              # 9 x (N,C,H,W)
    cols = jnp.stack(taps, axis=1)                              # (N,9,C,H,W)
    cols = cols.reshape(n, 9 * c, h * w)                        # rows=(tap,ci)
    return jnp.transpose(cols, (1, 0, 2)).reshape(9 * c, n * h * w)


# ----------------------------------------------------------------------------
# DecoderBlock forward
# ----------------------------------------------------------------------------
def init_decoder_block_params(key, in_planes, out_planes):
    k1, k2, k3, k4 = jax.random.split(key, 4)
    # kaiming_uniform_ (a=0, fan_in): bound = sqrt(6 / fan_in)
    bound3 = float(jnp.sqrt(6.0 / (in_planes * 9)))
    bound1 = float(jnp.sqrt(6.0 / in_planes))
    return dict(
        w3=jax.random.uniform(k1, (3, 3, in_planes, in_planes),
                              jnp.float32, -bound3, bound3),     # HWIO
        gamma3=1.0 + 0.02 * jax.random.normal(k2, (in_planes,), jnp.float32),
        beta3=jnp.zeros((in_planes,), jnp.float32),
        w1=jax.random.uniform(k3, (1, 1, in_planes, out_planes),
                              jnp.float32, -bound1, bound1),     # HWIO
        gamma1=1.0 + 0.02 * jax.random.normal(k4, (out_planes,), jnp.float32),
        beta1=jnp.zeros((out_planes,), jnp.float32),
    )


def decoder_block_forward(x_nchw, params, scale=2, last=False, eps=1e-5):
    x = x_nchw.astype(jnp.float32)
    n, c_in, h, w = x.shape
    c_out = params["w1"].shape[-1]
    ho, wo = (h * scale, w * scale) if scale > 1 else (h, w)
    hw, howo = h * w, ho * wo

    # Precompute tiny constant matrices (upsample kron, reshaped weights).
    ah = _interp_matrix(h, ho)                                  # (Ho, H)
    aw = _interp_matrix(w, wo)                                  # (Wo, W)
    mup = jnp.kron(ah.T, aw.T).astype(jnp.float32)              # (H*W, Ho*Wo)
    w1t = params["w1"].reshape(c_in, c_out).T.astype(jnp.float32)   # (Cout,Cin)
    g1 = params["gamma1"].reshape(c_out, 1).astype(jnp.float32)
    b1 = params["beta1"].reshape(c_out, 1).astype(jnp.float32)

    if last:
        xin = jnp.transpose(x, (1, 0, 2, 3)).reshape(c_in, n * hw)
        inputs = (xin, mup, w1t, g1, b1)
    else:
        xcol = _im2col_columns(x)                               # (9*Cin, N*H*W)
        w3t = params["w3"].reshape(9 * c_in, c_in).T.astype(jnp.float32)
        g3 = params["gamma3"].reshape(c_in, 1).astype(jnp.float32)
        b3 = params["beta3"].reshape(c_in, 1).astype(jnp.float32)
        inputs = (xcol, w3t, g3, b3, mup, w1t, g1, b1)

    kernel = _make_decoder_kernel(last, n, hw, howo, eps)

    def full_spec(a):
        nd = a.ndim
        return pl.BlockSpec(a.shape, lambda i, _nd=nd: (0,) * _nd)

    out = pl.pallas_call(
        kernel,
        out_shape=jax.ShapeDtypeStruct((n, c_out, howo), jnp.float32),
        grid=(1,),
        in_specs=[full_spec(a) for a in inputs],
        out_specs=pl.BlockSpec((n, c_out, howo), lambda i: (0, 0, 0)),
        compiler_params=pltpu.CompilerParams(
            dimension_semantics=("arbitrary",),
            vmem_limit_bytes=32 * 1024 * 1024),
    )(*inputs)

    # Output is already NCHW (channel-major, Ho*Wo on lanes); free reshape.
    return out.reshape(n, c_out, ho, wo)


# ----------------------------------------------------------------------------
# Main
# ----------------------------------------------------------------------------
if __name__ == "__main__":
    in_planes, out_planes = 8, 4
    batch, H, W = 2, 16, 16
    scale = 2

    root = jax.random.PRNGKey(0)
    k_x, k_p = jax.random.split(root)
    x = jax.random.normal(k_x, (batch, in_planes, H, W), jnp.float32)
    params = init_decoder_block_params(k_p, in_planes, out_planes)

    fwd = jax.jit(functools.partial(decoder_block_forward, scale=scale,
                                    last=False))
    out = jax.block_until_ready(fwd(x, params))

    assert out.shape == (batch, out_planes, H * scale, W * scale), out.shape
    assert bool(jnp.all(jnp.isfinite(out)))
    assert bool(jnp.all(out >= 0.0))  # ReLU epilogue
    print("KERNEL_OK")
</pallas_src>

<mosaic_0001>
module attributes {stable_mosaic.version = 11 : i64} {
  func.func @kernel(%arg0: i32, %arg1: memref<72x512xf32, #tpu.memory_space<vmem>>, %arg2: memref<8x72xf32, #tpu.memory_space<vmem>>, %arg3: memref<8x1xf32, #tpu.memory_space<vmem>>, %arg4: memref<8x1xf32, #tpu.memory_space<vmem>>, %arg5: memref<256x1024xf32, #tpu.memory_space<vmem>>, %arg6: memref<4x8xf32, #tpu.memory_space<vmem>>, %arg7: memref<4x1xf32, #tpu.memory_space<vmem>>, %arg8: memref<4x1xf32, #tpu.memory_space<vmem>>, %arg9: memref<2x4x1024xf32, #tpu.memory_space<vmem>>) attributes {dimension_semantics = [#tpu.dimension_semantics<arbitrary>], iteration_bounds = array<i64: 1>, scalar_prefetch = 0 : i64, scratch_operands = 0 : i64, tpu.core_type = #tpu.core_type<tc>, window_params = [{pipeline_mode = #tpu.pipeline_mode<synchronous>, transform_indices = @transform_0, window_bounds = array<i64: 72, 512>}, {pipeline_mode = #tpu.pipeline_mode<synchronous>, transform_indices = @transform_1, window_bounds = array<i64: 8, 72>}, {pipeline_mode = #tpu.pipeline_mode<synchronous>, transform_indices = @transform_2, window_bounds = array<i64: 8, 1>}, {pipeline_mode = #tpu.pipeline_mode<synchronous>, transform_indices = @transform_3, window_bounds = array<i64: 8, 1>}, {pipeline_mode = #tpu.pipeline_mode<synchronous>, transform_indices = @transform_4, window_bounds = array<i64: 256, 1024>}, {pipeline_mode = #tpu.pipeline_mode<synchronous>, transform_indices = @transform_5, window_bounds = array<i64: 4, 8>}, {pipeline_mode = #tpu.pipeline_mode<synchronous>, transform_indices = @transform_6, window_bounds = array<i64: 4, 1>}, {pipeline_mode = #tpu.pipeline_mode<synchronous>, transform_indices = @transform_7, window_bounds = array<i64: 4, 1>}, {pipeline_mode = #tpu.pipeline_mode<synchronous>, transform_indices = @transform_8, window_bounds = array<i64: 2, 4, 1024>}]} {
    %c0 = arith.constant 0 : index
    %c0_0 = arith.constant 0 : index
    %0 = vector.load %arg2[%c0, %c0_0] : memref<8x72xf32, #tpu.memory_space<vmem>>, vector<8x72xf32>
    %c0_1 = arith.constant 0 : index
    %c0_2 = arith.constant 0 : index
    %1 = vector.load %arg1[%c0_1, %c0_2] : memref<72x512xf32, #tpu.memory_space<vmem>>, vector<72x512xf32>
    %cst = arith.constant dense<0.000000e+00> : vector<8x512xf32>
    %2 = tpu.matmul %0, %1, %cst {dimension_numbers = #tpu.dot_dimension_numbers<[1], [0], [0], [1], [0, 0, 1, 1], [], []>} : vector<8x72xf32>, vector<72x512xf32>, vector<8x512xf32> -> vector<8x512xf32>
    %cst_3 = arith.constant dense<0.000000e+00> : vector<8xf32>
    %3 = vector.multi_reduction <add>, %2, %cst_3 [1] : vector<8x512xf32> to vector<8xf32>
    %4 = vector.shape_cast %3 : vector<8xf32> to vector<8x1xf32>
    %cst_4 = arith.constant 5.120000e+02 : f32
    %5 = vector.broadcast %cst_4 : f32 to vector<8x1xf32>
    %6 = arith.divf %4, %5 : vector<8x1xf32>
    %7 = arith.mulf %2, %2 : vector<8x512xf32>
    %cst_5 = arith.constant dense<0.000000e+00> : vector<8xf32>
    %8 = vector.multi_reduction <add>, %7, %cst_5 [1] : vector<8x512xf32> to vector<8xf32>
    %9 = vector.shape_cast %8 : vector<8xf32> to vector<8x1xf32>
    %cst_6 = arith.constant 5.120000e+02 : f32
    %10 = vector.broadcast %cst_6 : f32 to vector<8x1xf32>
    %11 = arith.divf %9, %10 : vector<8x1xf32>
    %12 = arith.mulf %6, %6 : vector<8x1xf32>
    %13 = arith.subf %11, %12 : vector<8x1xf32>
    %c0_7 = arith.constant 0 : index
    %c0_8 = arith.constant 0 : index
    %14 = vector.load %arg3[%c0_7, %c0_8] : memref<8x1xf32, #tpu.memory_space<vmem>>, vector<8x1xf32>
    %cst_9 = arith.constant 9.99999974E-6 : f32
    %15 = vector.broadcast %cst_9 : f32 to vector<8x1xf32>
    %16 = arith.addf %13, %15 : vector<8x1xf32>
    %17 = math.rsqrt %16 : vector<8x1xf32>
    %18 = arith.mulf %14, %17 : vector<8x1xf32>
    %c0_10 = arith.constant 0 : index
    %c0_11 = arith.constant 0 : index
    %19 = vector.load %arg4[%c0_10, %c0_11] : memref<8x1xf32, #tpu.memory_space<vmem>>, vector<8x1xf32>
    %20 = arith.mulf %6, %18 : vector<8x1xf32>
    %21 = arith.subf %19, %20 : vector<8x1xf32>
    %22 = vector.broadcast %18 : vector<8x1xf32> to vector<8x512xf32>
    %23 = arith.mulf %2, %22 : vector<8x512xf32>
    %24 = vector.broadcast %21 : vector<8x1xf32> to vector<8x512xf32>
    %25 = arith.addf %23, %24 : vector<8x512xf32>
    %cst_12 = arith.constant 0.000000e+00 : f32
    %26 = vector.broadcast %cst_12 : f32 to vector<8x512xf32>
    %27 = arith.maximumf %25, %26 : vector<8x512xf32>
    %c0_13 = arith.constant 0 : index
    %c0_14 = arith.constant 0 : index
    %28 = vector.load %arg5[%c0_13, %c0_14] : memref<256x1024xf32, #tpu.memory_space<vmem>>, vector<256x1024xf32>
    %c0_15 = arith.constant 0 : index
    %c0_16 = arith.constant 0 : index
    %29 = vector.load %arg6[%c0_15, %c0_16] : memref<4x8xf32, #tpu.memory_space<vmem>>, vector<4x8xf32>
    %cst_17 = arith.constant 0.000000e+00 : f32
    %30 = vector.broadcast %cst_17 : f32 to vector<4x1xf32>
    %cst_18 = arith.constant 0.000000e+00 : f32
    %31 = vector.broadcast %cst_18 : f32 to vector<4x1xf32>
    %32 = vector.extract_strided_slice %27 {offsets = [0, 0], sizes = [8, 256], strides = [1, 1]} : vector<8x512xf32> to vector<8x256xf32>
    %cst_19 = arith.constant dense<0.000000e+00> : vector<8x1024xf32>
    %33 = tpu.matmul %32, %28, %cst_19 {dimension_numbers = #tpu.dot_dimension_numbers<[1], [0], [0], [1], [0, 0, 1, 1], [], []>} : vector<8x256xf32>, vector<256x1024xf32>, vector<8x1024xf32> -> vector<8x1024xf32>
    %cst_20 = arith.constant dense<0.000000e+00> : vector<4x1024xf32>
    %34 = tpu.matmul %29, %33, %cst_20 {dimension_numbers = #tpu.dot_dimension_numbers<[1], [0], [0], [1], [0, 0, 1, 1], [], []>} : vector<4x8xf32>, vector<8x1024xf32>, vector<4x1024xf32> -> vector<4x1024xf32>
    %cst_21 = arith.constant dense<0.000000e+00> : vector<4xf32>
    %35 = vector.multi_reduction <add>, %34, %cst_21 [1] : vector<4x1024xf32> to vector<4xf32>
    %36 = vector.shape_cast %35 : vector<4xf32> to vector<4x1xf32>
    %37 = arith.addf %30, %36 : vector<4x1xf32>
    %38 = arith.mulf %34, %34 : vector<4x1024xf32>
    %cst_22 = arith.constant dense<0.000000e+00> : vector<4xf32>
    %39 = vector.multi_reduction <add>, %38, %cst_22 [1] : vector<4x1024xf32> to vector<4xf32>
    %40 = vector.shape_cast %39 : vector<4xf32> to vector<4x1xf32>
    %41 = arith.addf %31, %40 : vector<4x1xf32>
    %42 = vector.extract_strided_slice %27 {offsets = [0, 256], sizes = [8, 256], strides = [1, 1]} : vector<8x512xf32> to vector<8x256xf32>
    %cst_23 = arith.constant dense<0.000000e+00> : vector<8x1024xf32>
    %43 = tpu.matmul %42, %28, %cst_23 {dimension_numbers = #tpu.dot_dimension_numbers<[1], [0], [0], [1], [0, 0, 1, 1], [], []>} : vector<8x256xf32>, vector<256x1024xf32>, vector<8x1024xf32> -> vector<8x1024xf32>
    %cst_24 = arith.constant dense<0.000000e+00> : vector<4x1024xf32>
    %44 = tpu.matmul %29, %43, %cst_24 {dimension_numbers = #tpu.dot_dimension_numbers<[1], [0], [0], [1], [0, 0, 1, 1], [], []>} : vector<4x8xf32>, vector<8x1024xf32>, vector<4x1024xf32> -> vector<4x1024xf32>
    %cst_25 = arith.constant dense<0.000000e+00> : vector<4xf32>
    %45 = vector.multi_reduction <add>, %44, %cst_25 [1] : vector<4x1024xf32> to vector<4xf32>
    %46 = vector.shape_cast %45 : vector<4xf32> to vector<4x1xf32>
    %47 = arith.addf %37, %46 : vector<4x1xf32>
    %48 = arith.mulf %44, %44 : vector<4x1024xf32>
    %cst_26 = arith.constant dense<0.000000e+00> : vector<4xf32>
    %49 = vector.multi_reduction <add>, %48, %cst_26 [1] : vector<4x1024xf32> to vector<4xf32>
    %50 = vector.shape_cast %49 : vector<4xf32> to vector<4x1xf32>
    %51 = arith.addf %41, %50 : vector<4x1xf32>
    %cst_27 = arith.constant 2.048000e+03 : f32
    %52 = vector.broadcast %cst_27 : f32 to vector<4x1xf32>
    %53 = arith.divf %47, %52 : vector<4x1xf32>
    %cst_28 = arith.constant 2.048000e+03 : f32
    %54 = vector.broadcast %cst_28 : f32 to vector<4x1xf32>
    %55 = arith.divf %51, %54 : vector<4x1xf32>
    %56 = arith.mulf %53, %53 : vector<4x1xf32>
    %57 = arith.subf %55, %56 : vector<4x1xf32>
    %c0_29 = arith.constant 0 : index
    %c0_30 = arith.constant 0 : index
    %58 = vector.load %arg7[%c0_29, %c0_30] : memref<4x1xf32, #tpu.memory_space<vmem>>, vector<4x1xf32>
    %cst_31 = arith.constant 9.99999974E-6 : f32
    %59 = vector.broadcast %cst_31 : f32 to vector<4x1xf32>
    %60 = arith.addf %57, %59 : vector<4x1xf32>
    %61 = math.rsqrt %60 : vector<4x1xf32>
    %62 = arith.mulf %58, %61 : vector<4x1xf32>
    %c0_32 = arith.constant 0 : index
    %c0_33 = arith.constant 0 : index
    %63 = vector.load %arg8[%c0_32, %c0_33] : memref<4x1xf32, #tpu.memory_space<vmem>>, vector<4x1xf32>
    %64 = arith.mulf %53, %62 : vector<4x1xf32>
    %65 = arith.subf %63, %64 : vector<4x1xf32>
    %66 = vector.broadcast %62 : vector<4x1xf32> to vector<4x1024xf32>
    %67 = arith.mulf %34, %66 : vector<4x1024xf32>
    %68 = vector.broadcast %65 : vector<4x1xf32> to vector<4x1024xf32>
    %69 = arith.addf %67, %68 : vector<4x1024xf32>
    %cst_34 = arith.constant 0.000000e+00 : f32
    %70 = vector.broadcast %cst_34 : f32 to vector<4x1024xf32>
    %71 = arith.maximumf %69, %70 : vector<4x1024xf32>
    %c0_35 = arith.constant 0 : index
    %c0_36 = arith.constant 0 : index
    %c0_37 = arith.constant 0 : index
    %72 = vector.load %arg9[%c0_35, %c0_36, %c0_37] : memref<2x4x1024xf32, #tpu.memory_space<vmem>>, vector<1x4x1024xf32>
    %73 = vector.shape_cast %72 : vector<1x4x1024xf32> to vector<4x1024xf32>
    %74 = vector.shape_cast %71 : vector<4x1024xf32> to vector<1x4x1024xf32>
    tpu.vector_store %arg9[%c0_35, %c0_36, %c0_37], %74 {strides = array<i32>} : memref<2x4x1024xf32, #tpu.memory_space<vmem>>, vector<1x4x1024xf32>,
    %75 = vector.broadcast %62 : vector<4x1xf32> to vector<4x1024xf32>
    %76 = arith.mulf %44, %75 : vector<4x1024xf32>
    %77 = vector.broadcast %65 : vector<4x1xf32> to vector<4x1024xf32>
    %78 = arith.addf %76, %77 : vector<4x1024xf32>
    %cst_38 = arith.constant 0.000000e+00 : f32
    %79 = vector.broadcast %cst_38 : f32 to vector<4x1024xf32>
    %80 = arith.maximumf %78, %79 : vector<4x1024xf32>
    %c1 = arith.constant 1 : index
    %c0_39 = arith.constant 0 : index
    %c0_40 = arith.constant 0 : index
    %81 = vector.load %arg9[%c1, %c0_39, %c0_40] : memref<2x4x1024xf32, #tpu.memory_space<vmem>>, vector<1x4x1024xf32>
    %82 = vector.shape_cast %81 : vector<1x4x1024xf32> to vector<4x1024xf32>
    %83 = vector.shape_cast %80 : vector<4x1024xf32> to vector<1x4x1024xf32>
    tpu.vector_store %arg9[%c1, %c0_39, %c0_40], %83 {strides = array<i32>} : memref<2x4x1024xf32, #tpu.memory_space<vmem>>, vector<1x4x1024xf32>,
    return
  }
  func.func @transform_0(%arg0: i32) -> (i32, i32) {
    %c0_i32 = arith.constant 0 : i32
    %c0_i32_0 = arith.constant 0 : i32
    %c0_i32_1 = arith.constant 0 : i32
    return %c0_i32, %c0_i32_0 : i32, i32
  }
  func.func @transform_1(%arg0: i32) -> (i32, i32) {
    %c0_i32 = arith.constant 0 : i32
    %c0_i32_0 = arith.constant 0 : i32
    %c0_i32_1 = arith.constant 0 : i32
    return %c0_i32, %c0_i32_0 : i32, i32
  }
  func.func @transform_2(%arg0: i32) -> (i32, i32) {
    %c0_i32 = arith.constant 0 : i32
    %c0_i32_0 = arith.constant 0 : i32
    %c0_i32_1 = arith.constant 0 : i32
    return %c0_i32, %c0_i32_0 : i32, i32
  }
  func.func @transform_3(%arg0: i32) -> (i32, i32) {
    %c0_i32 = arith.constant 0 : i32
    %c0_i32_0 = arith.constant 0 : i32
    %c0_i32_1 = arith.constant 0 : i32
    return %c0_i32, %c0_i32_0 : i32, i32
  }
  func.func @transform_4(%arg0: i32) -> (i32, i32) {
    %c0_i32 = arith.constant 0 : i32
    %c0_i32_0 = arith.constant 0 : i32
    %c0_i32_1 = arith.constant 0 : i32
    return %c0_i32, %c0_i32_0 : i32, i32
  }
  func.func @transform_5(%arg0: i32) -> (i32, i32) {
    %c0_i32 = arith.constant 0 : i32
    %c0_i32_0 = arith.constant 0 : i32
    %c0_i32_1 = arith.constant 0 : i32
    return %c0_i32, %c0_i32_0 : i32, i32
  }
  func.func @transform_6(%arg0: i32) -> (i32, i32) {
    %c0_i32 = arith.constant 0 : i32
    %c0_i32_0 = arith.constant 0 : i32
    %c0_i32_1 = arith.constant 0 : i32
    return %c0_i32, %c0_i32_0 : i32, i32
  }
  func.func @transform_7(%arg0: i32) -> (i32, i32) {
    %c0_i32 = arith.constant 0 : i32
    %c0_i32_0 = arith.constant 0 : i32
    %c0_i32_1 = arith.constant 0 : i32
    return %c0_i32, %c0_i32_0 : i32, i32
  }
  func.func @transform_8(%arg0: i32) -> (i32, i32, i32) {
    %c0_i32 = arith.constant 0 : i32
    %c0_i32_0 = arith.constant 0 : i32
    %c0_i32_1 = arith.constant 0 : i32
    %c0_i32_2 = arith.constant 0 : i32
    return %c0_i32, %c0_i32_0, %c0_i32_1 : i32, i32, i32
  }
}

</mosaic_0001>

<bundles_post_ra>
// kernel: decoder_block_forward.1
= control target key start
LH: loop header
LB: loop body
LE: loop exit
PB: predicated region body
PF: predicated region fallthrough
CT: control target
= control target key end

     0   :  { %v4073_v3 = vmov 0.0   ;;  %vm66_vm0 = vcmask 588800   ;;  %v1956_v52 = vmov 0   ;;  %vm801_vm1 = vcmask 64512   ;;  %s4064_s0 = inlined_call_operand.vmem [shape: f32[72,512], index: 0, kind: input, shape index: {}]   ;;  %s4065_s1 = inlined_call_operand.vmem [shape: f32[8,72], index: 1, kind: input, shape index: {}]   ;;  %s4066_s4 = inlined_call_operand.vmem [shape: f32[256,1024], index: 4, kind: input, shape index: {}]   ;;  %s4067_s2 = inlined_call_operand.vmem [shape: f32[8,1], index: 2, kind: input, shape index: {}]   ;;  %s4068_s3 = inlined_call_operand.vmem [shape: f32[8,1], index: 3, kind: input, shape index: {}]   ;;  %s4069_s5 = inlined_call_operand.vmem [shape: f32[4,8], index: 5, kind: input, shape index: {}]   ;;  %s4070_s6 = inlined_call_operand.vmem [shape: f32[4,1], index: 6, kind: input, shape index: {}]   ;;  %s4071_s7 = inlined_call_operand.vmem [shape: f32[4,1], index: 7, kind: input, shape index: {}]   ;;  %s4072_s8 = inlined_call_operand.vmem [shape: f32[2,4,1024], index: 8, kind: output, shape index: {}]  }
   0x1   :  { %v63_v0 = vld [vmem:[%s4064_s0 + $0x108] sm:$0xff]  ;;  %v62_v1 = vld [vmem:[%s4064_s0 + $0x100] sm:$0xff]  ;;  %134 = vmatprep.mubr.f32.mxu0 %v4073_v3  ;;  %205 = vmatprep.mubr.f32.mxu1 %v4073_v3  ;;  %v65_v4 = vld [vmem:[%s4064_s0 + $0x118] sm:$0xff]  ;;  %vm1089_vm2 = vcmask 1043456  }
   0x2   :  { %v59_v2 = vld [vmem:[%s4064_s0 + $0xe8] sm:$0xff]  ;;  %84 = vmatprep.subr.mxu0 %v63_v0  ;;  %v58_v5 = vld [vmem:[%s4064_s0 + $0xe0] sm:$0xff]  ;;  %v64_v6 = vld [vmem:[%s4064_s0 + $0x110] sm:$0xff]  ;;  %155 = vmatprep.subr.mxu1 %v65_v4 }
   0x3   :  { %85 = vmatpush1.msra.mxu0 %v62_v1  ;;  %v55_v7 = vld [vmem:[%s4064_s0 + $0xc8] sm:$0xff]  ;;  %v61_v8 = vld [vmem:[%s4064_s0 + $0xf8] sm:$0xff]  ;;  %156 = vmatpush1.msra.mxu1 %v64_v6  ;;  %v54_v9 = vld [vmem:[%s4064_s0 + $0xc0] sm:$0xff] }
   0x4   :  { %86 = vmatprep.subr.mxu0 %v59_v2  ;;  %v60_v10 = vld [vmem:[%s4064_s0 + $0xf0] sm:$0xff]  ;;  %v57_v11 = vld [vmem:[%s4064_s0 + $0xd8] sm:$0xff]  ;;  %157 = vmatprep.subr.mxu1 %v61_v8  ;;  %v51_v12 = vld [vmem:[%s4064_s0 + $0xa8] sm:$0xff] }
   0x5   :  { %87 = vmatpush1.msra.mxu0 %v58_v5  ;;  %v56_v13 = vld [vmem:[%s4064_s0 + $0xd0] sm:$0xff]  ;;  %158 = vmatpush1.msra.mxu1 %v60_v10  ;;  %v50_v14 = vld [vmem:[%s4064_s0 + $0xa0] sm:$0xff]  ;;  %v53_v15 = vld [vmem:[%s4064_s0 + $0xb8] sm:$0xff] }
   0x6   :  { %88 = vmatprep.subr.mxu0 %v55_v7  ;;  %159 = vmatprep.subr.mxu1 %v57_v11  ;;  %v47_v16 = vld [vmem:[%s4064_s0 + $0x88] sm:$0xff]  ;;  %v52_v17 = vld [vmem:[%s4064_s0 + $0xb0] sm:$0xff]  ;;  %v46_v18 = vld [vmem:[%s4064_s0 + $0x80] sm:$0xff] }
   0x7   :  { %89 = vmatpush1.msra.mxu0 %v54_v9  ;;  %160 = vmatpush1.msra.mxu1 %v56_v13  ;;  %v49_v19 = vld [vmem:[%s4064_s0 + $0x98] sm:$0xff]  ;;  %v43_v20 = vld [vmem:[%s4064_s0 + $0x68] sm:$0xff]  ;;  %v48_v21 = vld [vmem:[%s4064_s0 + $0x90] sm:$0xff] }
   0x8   :  { %90 = vmatprep.subr.mxu0 %v51_v12  ;;  %161 = vmatprep.subr.mxu1 %v53_v15  ;;  %v42_v22 = vld [vmem:[%s4064_s0 + $0x60] sm:$0xff]  ;;  %v45_v23 = vld [vmem:[%s4064_s0 + $0x78] sm:$0xff]  ;;  %v39_v24 = vld [vmem:[%s4064_s0 + $0x48] sm:$0xff] }
   0x9   :  { %91 = vmatpush1.msra.mxu0 %v50_v14  ;;  %162 = vmatpush1.msra.mxu1 %v52_v17  ;;  %v44_v25 = vld [vmem:[%s4064_s0 + $0x70] sm:$0xff]  ;;  %v38_v26 = vld [vmem:[%s4064_s0 + $0x40] sm:$0xff]  ;;  %v41_v27 = vld [vmem:[%s4064_s0 + $0x58] sm:$0xff] }
   0xa   :  { %92 = vmatprep.subr.mxu0 %v47_v16  ;;  %163 = vmatprep.subr.mxu1 %v49_v19  ;;  %v35_v28 = vld [vmem:[%s4064_s0 + $0x28] sm:$0xff]  ;;  %v40_v29 = vld [vmem:[%s4064_s0 + $0x50] sm:$0xff]  ;;  %v34_v30 = vld [vmem:[%s4064_s0 + $0x20] sm:$0xff] }
   0xb   :  { %93 = vmatpush1.msra.mxu0 %v46_v18  ;;  %164 = vmatpush1.msra.mxu1 %v48_v21  ;;  %v37_v31 = vld [vmem:[%s4064_s0 + $0x38] sm:$0xff]  ;;  %v31_v32 = vld [vmem:[%s4064_s0 + $0x8] sm:$0xff]  ;;  %v36_v33 = vld [vmem:[%s4064_s0 + $0x30] sm:$0xff] }
   0xc   :  { %94 = vmatprep.subr.mxu0 %v43_v20  ;;  %165 = vmatprep.subr.mxu1 %v45_v23  ;;  %v30_v34 = vld [vmem:[%s4064_s0] sm:$0xff]  ;;  %v33_v35 = vld [vmem:[%s4064_s0 + $0x18] sm:$0xff]  ;;  %v32_v37 = vld [vmem:[%s4064_s0 + $0x10] sm:$0xff] }
   0xd   :  { %95 = vmatpush1.msra.mxu0 %v42_v22  ;;  %166 = vmatpush1.msra.mxu1 %v44_v25  ;;  %v29_v36 = vld [vmem:[%s4065_s1] sm:$0xff]  ;;  %v381_v53 = vld [vmem:[%s4066_s4 + $0x3c8] sm:$0xff]  ;;  %v383_v54 = vld [vmem:[%s4066_s4 + $0x3d8] sm:$0xff] }
   0xe   :  { %96 = vmatprep.subr.mxu0 %v39_v24  ;;  %167 = vmatprep.subr.mxu1 %v41_v27  ;;  %v380_v55 = vld [vmem:[%s4066_s4 + $0x3c0] sm:$0xff]  ;;  %v382_v56 = vld [vmem:[%s4066_s4 + $0x3d0] sm:$0xff]  ;;  %v373_v57 = vld [vmem:[%s4066_s4 + $0x388] sm:$0xff] }
   0xf   :  { %97 = vmatpush1.msra.mxu0 %v38_v26  ;;  %168 = vmatpush1.msra.mxu1 %v40_v29  ;;  %v375_v58 = vld [vmem:[%s4066_s4 + $0x398] sm:$0xff]  ;;  %v372_v59 = vld [vmem:[%s4066_s4 + $0x380] sm:$0xff]  ;;  %v374_v60 = vld [vmem:[%s4066_s4 + $0x390] sm:$0xff] }
  0x10   :  { %98 = vmatprep.subr.mxu0 %v35_v28  ;;  %169 = vmatprep.subr.mxu1 %v37_v31  ;;  %v365_v61 = vld [vmem:[%s4066_s4 + $0x348] sm:$0xff]  ;;  %v367_v62 = vld [vmem:[%s4066_s4 + $0x358] sm:$0xff]  ;;  %v364_v63 = vld [vmem:[%s4066_s4 + $0x340] sm:$0xff] }
  0x11   :  { %99 = vmatpush1.msra.mxu0 %v34_v30  ;;  %170 = vmatpush1.msra.mxu1 %v36_v33  ;;  %v366_v0 = vld [vmem:[%s4066_s4 + $0x350] sm:$0xff]  ;;  %v357_v1 = vld [vmem:[%s4066_s4 + $0x308] sm:$0xff]  ;;  %v359_v2 = vld [vmem:[%s4066_s4 + $0x318] sm:$0xff] }
  0x12   :  { %100 = vmatprep.subr.mxu0 %v31_v32  ;;  %171 = vmatprep.subr.mxu1 %v33_v35  ;;  %v356_v4 = vld [vmem:[%s4066_s4 + $0x300] sm:$0xff]  ;;  %v358_v5 = vld [vmem:[%s4066_s4 + $0x310] sm:$0xff]  ;;  %v349_v6 = vld [vmem:[%s4066_s4 + $0x2c8] sm:$0xff] }
  0x13   :  { %101 = vmatpush1.msra.mxu0 %v30_v34  ;;  %172 = vmatpush1.msra.mxu1 %v32_v37  ;;  %v351_v7 = vld [vmem:[%s4066_s4 + $0x2d8] sm:$0xff]  ;;  %v348_v8 = vld [vmem:[%s4066_s4 + $0x2c0] sm:$0xff]  ;;  %v350_v9 = vld [vmem:[%s4066_s4 + $0x2d0] sm:$0xff] }
  0x14   :  { %1861 = vmatmul.mubr.msk.f32.vlgmr.msra.gmra.mxu0 %vm66_vm0, %v29_v36  ;;  %1862 = vmatmul.mubr.msk.f32.vlgmr.msra.gmra.mxu1 %vm66_vm0, %v29_v36  ;;  %v341_v10 = vld [vmem:[%s4066_s4 + $0x288] sm:$0xff]  ;;  %v343_v11 = vld [vmem:[%s4066_s4 + $0x298] sm:$0xff]  ;;  %v340_v12 = vld [vmem:[%s4066_s4 + $0x280] sm:$0xff] }
  0x15   :  { %1877 = vset.pattern.permute.xlu1 %v1956_v52  ;;  %1878 = vset.pattern.permute.xlu0 %v1956_v52  ;;  %v342_v13 = vld [vmem:[%s4066_s4 + $0x290] sm:$0xff]  ;;  %v333_v14 = vld [vmem:[%s4066_s4 + $0x248] sm:$0xff]  ;;  %v335_v15 = vld [vmem:[%s4066_s4 + $0x258] sm:$0xff] }
  0x16   :  { %517 = vmatprep.subr.mxu0 %v381_v53  ;;  %588 = vmatprep.subr.mxu1 %v383_v54  ;;  %v332_v16 = vld [vmem:[%s4066_s4 + $0x240] sm:$0xff]  ;;  %v334_v17 = vld [vmem:[%s4066_s4 + $0x250] sm:$0xff]  ;;  %v325_v18 = vld [vmem:[%s4066_s4 + $0x208] sm:$0xff] }
  0x17   :  { %518 = vmatpush1.msra.mxu0 %v380_v55  ;;  %589 = vmatpush1.msra.mxu1 %v382_v56  ;;  %v327_v19 = vld [vmem:[%s4066_s4 + $0x218] sm:$0xff]  ;;  %v324_v20 = vld [vmem:[%s4066_s4 + $0x200] sm:$0xff]  ;;  %v326_v21 = vld [vmem:[%s4066_s4 + $0x210] sm:$0xff] }
  0x18   :  { %519 = vmatprep.subr.mxu0 %v373_v57  ;;  %590 = vmatprep.subr.mxu1 %v375_v58  ;;  %v317_v22 = vld [vmem:[%s4066_s4 + $0x1c8] sm:$0xff]  ;;  %v319_v23 = vld [vmem:[%s4066_s4 + $0x1d8] sm:$0xff]  ;;  %v316_v24 = vld [vmem:[%s4066_s4 + $0x1c0] sm:$0xff] }
  0x19   :  { %520 = vmatpush1.msra.mxu0 %v372_v59  ;;  %591 = vmatpush1.msra.mxu1 %v374_v60  ;;  %v318_v25 = vld [vmem:[%s4066_s4 + $0x1d0] sm:$0xff]  ;;  %v309_v26 = vld [vmem:[%s4066_s4 + $0x188] sm:$0xff]  ;;  %v311_v27 = vld [vmem:[%s4066_s4 + $0x198] sm:$0xff] }
  0x1a   :  { %521 = vmatprep.subr.mxu0 %v365_v61  ;;  %592 = vmatprep.subr.mxu1 %v367_v62  ;;  %v308_v28 = vld [vmem:[%s4066_s4 + $0x180] sm:$0xff]  ;;  %v310_v29 = vld [vmem:[%s4066_s4 + $0x190] sm:$0xff]  ;;  %v301_v30 = vld [vmem:[%s4066_s4 + $0x148] sm:$0xff] }
  0x1b   :  { %522 = vmatpush1.msra.mxu0 %v364_v63  ;;  %593 = vmatpush1.msra.mxu1 %v366_v0  ;;  %v303_v31 = vld [vmem:[%s4066_s4 + $0x158] sm:$0xff]  ;;  %v300_v32 = vld [vmem:[%s4066_s4 + $0x140] sm:$0xff]  ;;  %v302_v33 = vld [vmem:[%s4066_s4 + $0x150] sm:$0xff] }
  0x1c   :  { %523 = vmatprep.subr.mxu0 %v357_v1  ;;  %594 = vmatprep.subr.mxu1 %v359_v2  ;;  %v293_v34 = vld [vmem:[%s4066_s4 + $0x108] sm:$0xff]  ;;  %v295_v35 = vld [vmem:[%s4066_s4 + $0x118] sm:$0xff]  ;;  %v292_v36 = vld [vmem:[%s4066_s4 + $0x100] sm:$0xff] }
  0x1d   :  { %524 = vmatpush1.msra.mxu0 %v356_v4  ;;  %595 = vmatpush1.msra.mxu1 %v358_v5  ;;  %v294_v37 = vld [vmem:[%s4066_s4 + $0x110] sm:$0xff]  ;;  %v268_v52 = vld [vmem:[%s4066_s4 + $0x40] sm:$0xff]  ;;  %v261_v54 = vld [vmem:[%s4066_s4 + $0x8] sm:$0xff] }
  0x1e   :  { %525 = vmatprep.subr.mxu0 %v349_v6  ;;  %596 = vmatprep.subr.mxu1 %v351_v7  ;;  %v270_v53 = vld [vmem:[%s4066_s4 + $0x50] sm:$0xff]  ;;  %v263_v55 = vld [vmem:[%s4066_s4 + $0x18] sm:$0xff]  ;;  %v260_v56 = vld [vmem:[%s4066_s4] sm:$0xff] }
  0x1f   :  { %526 = vmatpush1.msra.mxu0 %v348_v8  ;;  %597 = vmatpush1.msra.mxu1 %v350_v9  ;;  %v262_v57 = vld [vmem:[%s4066_s4 + $0x10] sm:$0xff]  ;;  %v509_v58 = vld [vmem:[%s4066_s4 + $0x7c8] sm:$0xff]  ;;  %v511_v59 = vld [vmem:[%s4066_s4 + $0x7d8] sm:$0xff] }
  0x20   :  { %527 = vmatprep.subr.mxu0 %v341_v10  ;;  %598 = vmatprep.subr.mxu1 %v343_v11  ;;  %v508_v60 = vld [vmem:[%s4066_s4 + $0x7c0] sm:$0xff]  ;;  %v510_v61 = vld [vmem:[%s4066_s4 + $0x7d0] sm:$0xff]  ;;  %v501_v62 = vld [vmem:[%s4066_s4 + $0x788] sm:$0xff] }
  0x21   :  { %528 = vmatpush1.msra.mxu0 %v340_v12  ;;  %599 = vmatpush1.msra.mxu1 %v342_v13  ;;  %v503_v63 = vld [vmem:[%s4066_s4 + $0x798] sm:$0xff]  ;;  %v500_v0 = vld [vmem:[%s4066_s4 + $0x780] sm:$0xff]  ;;  %v502_v1 = vld [vmem:[%s4066_s4 + $0x790] sm:$0xff] }
  0x22   :  { %529 = vmatprep.subr.mxu0 %v333_v14  ;;  %600 = vmatprep.subr.mxu1 %v335_v15  ;;  %v2354_v2 = vld [vmem:[%s4066_s4 + $0x748] sm:$0xff]  ;;  %v2359_v4 = vld [vmem:[%s4066_s4 + $0x758] sm:$0xff]  ;;  %v2364_v5 = vld [vmem:[%s4066_s4 + $0x740] sm:$0xff] }
  0x23   :  { %530 = vmatpush1.msra.mxu0 %v332_v16  ;;  %601 = vmatpush1.msra.mxu1 %v334_v17  ;;  %v2369_v6 = vld [vmem:[%s4066_s4 + $0x750] sm:$0xff]  ;;  %v2374_v7 = vld [vmem:[%s4066_s4 + $0x708] sm:$0xff]  ;;  %v2379_v8 = vld [vmem:[%s4066_s4 + $0x718] sm:$0xff] }
  0x24   :  { %531 = vmatprep.subr.mxu0 %v325_v18  ;;  %602 = vmatprep.subr.mxu1 %v327_v19  ;;  %v2386_v9 = vld [vmem:[%s4066_s4 + $0x700] sm:$0xff]  ;;  %v2391_v10 = vld [vmem:[%s4066_s4 + $0x710] sm:$0xff]  ;;  %v2398_v11 = vld [vmem:[%s4066_s4 + $0x6c8] sm:$0xff] }
  0x25   :  { %532 = vmatpush1.msra.mxu0 %v324_v20  ;;  %603 = vmatpush1.msra.mxu1 %v326_v21  ;;  %v2403_v12 = vld [vmem:[%s4066_s4 + $0x6d8] sm:$0xff]  ;;  %v2410_v13 = vld [vmem:[%s4066_s4 + $0x6c0] sm:$0xff]  ;;  %v2415_v14 = vld [vmem:[%s4066_s4 + $0x6d0] sm:$0xff] }
  0x26   :  { %533 = vmatprep.subr.mxu0 %v317_v22  ;;  %604 = vmatprep.subr.mxu1 %v319_v23  ;;  %v2422_v15 = vld [vmem:[%s4066_s4 + $0x688] sm:$0xff]  ;;  %v2427_v16 = vld [vmem:[%s4066_s4 + $0x698] sm:$0xff]  ;;  %v2434_v17 = vld [vmem:[%s4066_s4 + $0x680] sm:$0xff] }
  0x27   :  { %534 = vmatpush1.msra.mxu0 %v316_v24  ;;  %605 = vmatpush1.msra.mxu1 %v318_v25  ;;  %v2439_v18 = vld [vmem:[%s4066_s4 + $0x690] sm:$0xff]  ;;  %v2446_v19 = vld [vmem:[%s4066_s4 + $0x648] sm:$0xff]  ;;  %v2451_v20 = vld [vmem:[%s4066_s4 + $0x658] sm:$0xff] }
  0x28   :  { %535 = vmatprep.subr.mxu0 %v309_v26  ;;  %606 = vmatprep.subr.mxu1 %v311_v27  ;;  %v2458_v21 = vld [vmem:[%s4066_s4 + $0x640] sm:$0xff]  ;;  %v2463_v22 = vld [vmem:[%s4066_s4 + $0x650] sm:$0xff]  ;;  %v2470_v23 = vld [vmem:[%s4066_s4 + $0x608] sm:$0xff] }
  0x29   :  { %536 = vmatpush1.msra.mxu0 %v308_v28  ;;  %607 = vmatpush1.msra.mxu1 %v310_v29  ;;  %v2475_v24 = vld [vmem:[%s4066_s4 + $0x618] sm:$0xff]  ;;  %v2482_v25 = vld [vmem:[%s4066_s4 + $0x600] sm:$0xff]  ;;  %v2487_v26 = vld [vmem:[%s4066_s4 + $0x610] sm:$0xff] }
  0x2a   :  { %537 = vmatprep.subr.mxu0 %v301_v30  ;;  %608 = vmatprep.subr.mxu1 %v303_v31  ;;  %v2494_v27 = vld [vmem:[%s4066_s4 + $0x5c8] sm:$0xff]  ;;  %v2499_v28 = vld [vmem:[%s4066_s4 + $0x5d8] sm:$0xff]  ;;  %v2506_v29 = vld [vmem:[%s4066_s4 + $0x5c0] sm:$0xff] }
  0x2b   :  { %538 = vmatpush1.msra.mxu0 %v300_v32  ;;  %609 = vmatpush1.msra.mxu1 %v302_v33  ;;  %v2511_v30 = vld [vmem:[%s4066_s4 + $0x5d0] sm:$0xff]  ;;  %v2518_v31 = vld [vmem:[%s4066_s4 + $0x588] sm:$0xff]  ;;  %v2523_v32 = vld [vmem:[%s4066_s4 + $0x598] sm:$0xff] }
  0x2c   :  { %539 = vmatprep.subr.mxu0 %v293_v34  ;;  %610 = vmatprep.subr.mxu1 %v295_v35  ;;  %v2530_v33 = vld [vmem:[%s4066_s4 + $0x580] sm:$0xff]  ;;  %v2535_v34 = vld [vmem:[%s4066_s4 + $0x590] sm:$0xff]  ;;  %v2542_v35 = vld [vmem:[%s4066_s4 + $0x548] sm:$0xff] }
  0x2d   :  { %540 = vmatpush1.msra.mxu0 %v292_v36  ;;  %611 = vmatpush1.msra.mxu1 %v294_v37  ;;  %v2547_v36 = vld [vmem:[%s4066_s4 + $0x558] sm:$0xff]  ;;  %v2554_v37 = vld [vmem:[%s4066_s4 + $0x540] sm:$0xff] }
  0xd4   :  { %v2115_v38 = vpop.f32.mrf.mxu0  ;;  %v2119_v40 = vpop.f32.mrf.mxu1 }
  0xd5   :  { %v219_v41 = vmul.f32 %v2115_v38, %v2115_v38  ;;  %v221_v44 = vmul.f32 %v2119_v40, %v2119_v40 }
  0xd6   :  { %v2117_v39 = vpop.f32.mrf.mxu0  ;;  %v2130_v47 = vpop.f32.mrf.mxu1 }
  0xd7   :  { %v212_v42 = vadd.f32 %v2117_v39, %v2115_v38  ;;  %v220_v43 = vmul.f32 %v2117_v39, %v2117_v39  ;;  %v222_v50 = vmul.f32 %v2130_v47, %v2130_v47 }
  0xd9   :  { %v213_v45 = vadd.f32 %v212_v42, %v2119_v40  ;;  %v223_v46 = vadd.f32 %v220_v43, %v219_v41  ;;  %v285_v41 = vld [vmem:[%s4066_s4 + $0xc8] sm:$0xff]  ;;  %v287_v42 = vld [vmem:[%s4066_s4 + $0xd8] sm:$0xff]  ;;  %v284_v43 = vld [vmem:[%s4066_s4 + $0xc0] sm:$0xff] }
  0xda   :  { %541 = vmatprep.subr.mxu0 %v285_v41  ;;  %612 = vmatprep.subr.mxu1 %v287_v42  ;;  %v2559_v41 = vld [vmem:[%s4066_s4 + $0x550] sm:$0xff]  ;;  %v2566_v42 = vld [vmem:[%s4066_s4 + $0x508] sm:$0xff] }
  0xdb   :  { %v214_v48 = vadd.f32 %v213_v45, %v2130_v47  ;;  %v224_v49 = vadd.f32 %v223_v46, %v221_v44  ;;  %v286_v44 = vld [vmem:[%s4066_s4 + $0xd0] sm:$0xff]  ;;  %v277_v45 = vld [vmem:[%s4066_s4 + $0x88] sm:$0xff]  ;;  %v279_v46 = vld [vmem:[%s4066_s4 + $0x98] sm:$0xff]  ;;  %542 = vmatpush1.msra.mxu0 %v284_v43 }
  0xdc   :  { %613 = vmatpush1.msra.mxu1 %v286_v44  ;;  %543 = vmatprep.subr.mxu0 %v277_v45  ;;  %v2571_v43 = vld [vmem:[%s4066_s4 + $0x518] sm:$0xff]  ;;  %v2578_v44 = vld [vmem:[%s4066_s4 + $0x500] sm:$0xff]  ;;  %v2583_v45 = vld [vmem:[%s4066_s4 + $0x510] sm:$0xff] }
  0xdd   :  { %215 = vadd.xlane.f32.xlu0 %v214_v48  ;;  %v225_v51 = vadd.f32 %v224_v49, %v222_v50  ;;  %v276_v48 = vld [vmem:[%s4066_s4 + $0x80] sm:$0xff]  ;;  %v278_v49 = vld [vmem:[%s4066_s4 + $0x90] sm:$0xff]  ;;  %v269_v50 = vld [vmem:[%s4066_s4 + $0x48] sm:$0xff]  ;;  %614 = vmatprep.subr.mxu1 %v279_v46 }
  0xde   :  { %544 = vmatpush1.msra.mxu0 %v276_v48  ;;  %615 = vmatpush1.msra.mxu1 %v278_v49 }
  0xdf   :  { %545 = vmatprep.subr.mxu0 %v269_v50 }
  0xe0   :  { %546 = vmatpush1.msra.mxu0 %v268_v52 }
  0xe1   :  { %226 = vadd.xlane.f32.xlu0 %v225_v51  ;;  %v271_v51 = vld [vmem:[%s4066_s4 + $0x58] sm:$0xff]  ;;  %547 = vmatprep.subr.mxu0 %v261_v54  ;;  %v231_v54 = vld [vmem:[%s4067_s2] sm:$0xff] }
  0xe2   :  { %616 = vmatprep.subr.mxu1 %v271_v51  ;;  %548 = vmatpush1.msra.mxu0 %v260_v56  ;;  %v2602_v56 = vld [vmem:[%s4066_s4 + $0x4d8] sm:$0xff] }
  0xe3   :  { %617 = vmatpush1.msra.mxu1 %v270_v53  ;;  %549 = vmatprep.subr.mxu0 %v509_v58  ;;  %v2614_v58 = vld [vmem:[%s4066_s4 + $0x4d0] sm:$0xff] }
  0xe4   :  { %618 = vmatprep.subr.mxu1 %v263_v55  ;;  %550 = vmatpush2.msra.mxu0 %v508_v60  ;;  %v2597_v55 = vld [vmem:[%s4066_s4 + $0x4c8] sm:$0xff] }
  0xe5   :  { %619 = vmatpush1.msra.mxu1 %v262_v57  ;;  %551 = vmatprep.subr.mxu0 %v501_v62  ;;  %v2609_v57 = vld [vmem:[%s4066_s4 + $0x4c0] sm:$0xff] }
  0xe6   :  { %620 = vmatprep.subr.mxu1 %v511_v59  ;;  %552 = vmatpush2.msra.mxu0 %v500_v0  ;;  %v2619_v59 = vld [vmem:[%s4066_s4 + $0x488] sm:$0xff]  ;;  %v2631_v62 = vld [vmem:[%s4066_s4 + $0x480] sm:$0xff] }
  0xe7   :  { %621 = vmatpush2.msra.mxu1 %v510_v61  ;;  %553 = vmatprep.subr.mxu0 %v2354_v2  ;;  %v2626_v61 = vld [vmem:[%s4066_s4 + $0x498] sm:$0xff] }
  0xe8   :  { %622 = vmatprep.subr.mxu1 %v503_v63  ;;  %554 = vmatpush2.msra.mxu0 %v2364_v5  ;;  %v2636_v63 = vld [vmem:[%s4066_s4 + $0x490] sm:$0xff] }
  0xe9   :  { %623 = vmatpush2.msra.mxu1 %v502_v1  ;;  %555 = vmatprep.subr.mxu0 %v2374_v7  ;;  %v235_v1 = vld [vmem:[%s4068_s3] sm:$0xff] }
  0xea   :  { %624 = vmatprep.subr.mxu1 %v2359_v4  ;;  %556 = vmatpush2.msra.mxu0 %v2386_v9 }
  0xeb   :  { %625 = vmatpush2.msra.mxu1 %v2369_v6  ;;  %557 = vmatprep.subr.mxu0 %v2398_v11 }
  0xec   :  { %626 = vmatprep.subr.mxu1 %v2379_v8  ;;  %558 = vmatpush2.msra.mxu0 %v2410_v13 }
  0xed   :  { %627 = vmatpush2.msra.mxu1 %v2391_v10  ;;  %559 = vmatprep.subr.mxu0 %v2422_v15 }
  0xee   :  { %628 = vmatprep.subr.mxu1 %v2403_v12  ;;  %560 = vmatpush2.msra.mxu0 %v2434_v17 }
  0xef   :  { %629 = vmatpush2.msra.mxu1 %v2415_v14  ;;  %561 = vmatprep.subr.mxu0 %v2446_v19 }
  0xf0   :  { %630 = vmatprep.subr.mxu1 %v2427_v16  ;;  %562 = vmatpush2.msra.mxu0 %v2458_v21 }
  0xf1   :  { %631 = vmatpush2.msra.mxu1 %v2439_v18  ;;  %563 = vmatprep.subr.mxu0 %v2470_v23 }
  0xf2   :  { %632 = vmatprep.subr.mxu1 %v2451_v20  ;;  %564 = vmatpush2.msra.mxu0 %v2482_v25 }
  0xf3   :  { %633 = vmatpush2.msra.mxu1 %v2463_v22  ;;  %565 = vmatprep.subr.mxu0 %v2494_v27 }
  0xf4   :  { %634 = vmatprep.subr.mxu1 %v2475_v24  ;;  %566 = vmatpush2.msra.mxu0 %v2506_v29 }
  0xf5   :  { %635 = vmatpush2.msra.mxu1 %v2487_v26  ;;  %567 = vmatprep.subr.mxu0 %v2518_v31 }
  0xf6   :  { %636 = vmatprep.subr.mxu1 %v2499_v28  ;;  %568 = vmatpush2.msra.mxu0 %v2530_v33 }
  0xf7   :  { %637 = vmatpush2.msra.mxu1 %v2511_v30  ;;  %569 = vmatprep.subr.mxu0 %v2542_v35 }
  0xf8   :  { %638 = vmatprep.subr.mxu1 %v2523_v32  ;;  %570 = vmatpush2.msra.mxu0 %v2554_v37 }
  0xf9   :  { %639 = vmatpush2.msra.mxu1 %v2535_v34  ;;  %571 = vmatprep.subr.mxu0 %v2566_v42 }
  0xfa   :  { %640 = vmatprep.subr.mxu1 %v2547_v36  ;;  %572 = vmatpush2.msra.mxu0 %v2578_v44 }
  0xfb   :  { %641 = vmatpush2.msra.mxu1 %v2559_v41  ;;  %573 = vmatprep.subr.mxu0 %v2597_v55 }
  0xfc   :  { %642 = vmatprep.subr.mxu1 %v2571_v43  ;;  %574 = vmatpush2.msra.mxu0 %v2609_v57 }
  0xfd   :  { %643 = vmatpush2.msra.mxu1 %v2583_v45  ;;  %575 = vmatprep.subr.mxu0 %v2619_v59 }
  0xfe   :  { %644 = vmatprep.subr.mxu1 %v2602_v56  ;;  %576 = vmatpush2.msra.mxu0 %v2631_v62 }
  0xff   :  { %645 = vmatpush2.msra.mxu1 %v2614_v58 }
 0x100   :  { %646 = vmatprep.subr.mxu1 %v2626_v61 }
 0x101   :  { %647 = vmatpush2.msra.mxu1 %v2636_v63 }
 0x166   :  { %v216_v46 = vpop.xlane.xlu0 %215 }
 0x167   :  { %v218_v48 = vmul.f32 0.001953125, %v216_v46  ;;  %v2648_v46 = vld [vmem:[%s4066_s4 + $0x448] sm:$0xff] }
 0x168   :  { %577 = vmatprep.subr.mxu0 %v2648_v46 }
 0x169   :  { %v229_v50 = vmul.f32 %v218_v48, %v218_v48 }
 0x16a   :  { %v227_v49 = vpop.xlane.xlu0 %226 }
 0x16b   :  { %v228_v51 = vmul.f32 0.001953125, %v227_v49  ;;  %v2653_v49 = vld [vmem:[%s4066_s4 + $0x458] sm:$0xff] }
 0x16c   :  { %648 = vmatprep.subr.mxu1 %v2653_v49 }
 0x16d   :  { %v230_v52 = vsub.f32 %v228_v51, %v229_v50  ;;  %v2659_v51 = vld [vmem:[%s4066_s4 + $0x440] sm:$0xff] }
 0x16e   :  { %4208 = vst [vmem:[#allocation2_spill] sm:$0xff] %v2659_v51  ;;  %578 = vmatpush2.msra.mxu0 %v2659_v51 }
 0x16f   :  { %v232_v53 = vadd.f32 1e-05, %v230_v52  ;;  %v2664_v52 = vld [vmem:[%s4066_s4 + $0x450] sm:$0xff] }
 0x170   :  { %4209 = vst [vmem:[#allocation3_spill] sm:$0xff] %v2664_v52  ;;  %649 = vmatpush2.msra.mxu1 %v2664_v52 }
 0x171   :  { %1879 = vrsqrt.f32 %v232_v53  ;;  %v2676_v53 = vld [vmem:[%s4066_s4 + $0x418] sm:$0xff] }
 0x172   :  { %4211 = vst [vmem:[#allocation5_spill] sm:$0xff] %v2676_v53  ;;  %650 = vmatprep.subr.mxu1 %v2676_v53 }
 0x17e   :  { %v1880_v60 = vpop.eup %1879 }
 0x17f   :  { %v234_v0 = vmul.f32 %v1880_v60, %v231_v54  ;;  %v2683_v60 = vld [vmem:[%s4066_s4 + $0x400] sm:$0xff] }
 0x180   :  { %4212 = vst [vmem:[#allocation6_spill] sm:$0xff] %v2683_v60 }
 0x181   :  { %240 = vperm.xlu1 %1877, %v234_v0   ;;  %v236_v50 = vmul.f32 %v234_v0, %v218_v48  ;;  %v2671_v48 = vld [vmem:[%s4066_s4 + $0x408] sm:$0xff]  ;;  %v2688_v0 = vld [vmem:[%s4066_s4 + $0x410] sm:$0xff] }
 0x182   :  { %4210 = vst [vmem:[#allocation4_spill] sm:$0xff] %v2671_v48  ;;  %579 = vmatprep.subr.mxu0 %v2671_v48  ;;  %4213 = vst [vmem:[#allocation7_spill] sm:$0xff] %v2688_v0  ;;  %651 = vmatpush2.msra.mxu1 %v2688_v0 }
 0x183   :  { %v237_v54 = vsub.f32 %v235_v1, %v236_v50  ;;  %580 = vmatpush2.msra.mxu0 %v2683_v60  ;;  %v2695_v1 = vld [vmem:[%s4066_s4 + $0x3e8] sm:$0xff]  ;;  %v2700_v50 = vld [vmem:[%s4066_s4 + $0x3f8] sm:$0xff] }
 0x184   :  { %4214 = vst [vmem:[#allocation8_spill] sm:$0xff] %v2695_v1  ;;  %4215 = vst [vmem:[#allocation9_spill] sm:$0xff] %v2700_v50  ;;  %659 = vmatprep.subr.mxu0 %v2695_v1  ;;  %730 = vmatprep.subr.mxu1 %v2700_v50  ;;  %v2720_v50 = vld [vmem:[%s4066_s4 + $0x3e0] sm:$0xff]  ;;  %v2778_v1 = vld [vmem:[%s4066_s4 + $0x328] sm:$0xff] }
 0x185   :  { %249 = vperm.xlu1 %1877, %v237_v54   ;;  %4216 = vst [vmem:[#allocation10_spill] sm:$0xff] %v2720_v50  ;;  %4226 = vst [vmem:[#allocation20_spill] sm:$0xff] %v2778_v1 }
 0x1fc   :  { %v2705_v3 = vpop.permute.xlu1 %240 }
 0x1fd   :  { %v243_v60 = vmul.f32 %v2705_v3, %v2115_v38  ;;  %v244_v53 = vmul.f32 %v2705_v3, %v2117_v39  ;;  %v2725_v38 = vld [vmem:[%s4066_s4 + $0x3f0] sm:$0xff]  ;;  %v2730_v39 = vld [vmem:[%s4066_s4 + $0x3a8] sm:$0xff] }
 0x1fe   :  { %4217 = vst [vmem:[#allocation11_spill] sm:$0xff] %v2725_v38  ;;  %4218 = vst [vmem:[#allocation12_spill] sm:$0xff] %v2730_v39 }
 0x200   :  { %v2711_v48 = vpop.permute.xlu1 %249 }
 0x201   :  { %v252_v52 = vadd.f32 %v2711_v48, %v243_v60  ;;  %v253_v54 = vadd.f32 %v2711_v48, %v244_v53  ;;  %v2744_v53 = vld [vmem:[%s4066_s4 + $0x3a0] sm:$0xff]  ;;  %v2749_v60 = vld [vmem:[%s4066_s4 + $0x3b0] sm:$0xff] }
 0x202   :  { %4220 = vst [vmem:[#allocation14_spill] sm:$0xff] %v2744_v53  ;;  %4221 = vst [vmem:[#allocation15_spill] sm:$0xff] %v2749_v60 }
 0x203   :  { %v2715_v51 = vmax.f32 %v252_v52, 0.0  ;;  %v257_v0 = vmax.f32 %v253_v54, 0.0  ;;  %v2737_v52 = vld [vmem:[%s4066_s4 + $0x3b8] sm:$0xff]  ;;  %v2755_v54 = vld [vmem:[%s4066_s4 + $0x368] sm:$0xff] }
 0x204   :  { %4219 = vst [vmem:[#allocation13_spill] sm:$0xff] %v2737_v52  ;;  %4222 = vst [vmem:[#allocation16_spill] sm:$0xff] %v2755_v54 }
 0x205   :  { %581 = vmatprep.mubr.f32.mxu0 %v257_v0  ;;  %652 = vmatprep.mubr.f32.mxu1 %v257_v0 }
 0x206   :  { %582 = vmatmul.mubr.f32.vlgmr.msra.gmra.mxu0 %v2715_v51  ;;  %653 = vmatmul.mubr.f32.vlgmr.msra.gmra.mxu1 %v2715_v51 }
 0x207   :  { %660 = vmatpush1.msra.mxu0 %v2720_v50  ;;  %731 = vmatpush1.msra.mxu1 %v2725_v38  ;;  %v2760_v38 = vld [vmem:[%s4066_s4 + $0x378] sm:$0xff]  ;;  %v2766_v50 = vld [vmem:[%s4066_s4 + $0x360] sm:$0xff] }
 0x208   :  { %661 = vmatprep.subr.mxu0 %v2730_v39  ;;  %723 = vmatprep.mubr.f32.mxu0 %v257_v0  ;;  %4223 = vst [vmem:[#allocation17_spill] sm:$0xff] %v2760_v38  ;;  %4224 = vst [vmem:[#allocation18_spill] sm:$0xff] %v2766_v50  ;;  %v2771_v39 = vld [vmem:[%s4066_s4 + $0x370] sm:$0xff] }
 0x209   :  { %732 = vmatprep.subr.mxu1 %v2737_v52  ;;  %794 = vmatprep.mubr.f32.mxu1 %v257_v0  ;;  %4225 = vst [vmem:[#allocation19_spill] sm:$0xff] %v2771_v39  ;;  %v2783_v0 = vld [vmem:[%s4066_s4 + $0x338] sm:$0xff] }
 0x20a   :  { %662 = vmatpush1.msra.mxu0 %v2744_v53  ;;  %733 = vmatpush1.msra.mxu1 %v2749_v60  ;;  %4227 = vst [vmem:[#allocation21_spill] sm:$0xff] %v2783_v0  ;;  %v2790_v53 = vld [vmem:[%s4066_s4 + $0x320] sm:$0xff]  ;;  %v2795_v60 = vld [vmem:[%s4066_s4 + $0x330] sm:$0xff] }
 0x20b   :  { %663 = vmatprep.subr.mxu0 %v2755_v54  ;;  %734 = vmatprep.subr.mxu1 %v2760_v38  ;;  %4228 = vst [vmem:[#allocation22_spill] sm:$0xff] %v2790_v53  ;;  %4229 = vst [vmem:[#allocation23_spill] sm:$0xff] %v2795_v60  ;;  %v2802_v54 = vld [vmem:[%s4066_s4 + $0x2e8] sm:$0xff]  ;;  %v2807_v38 = vld [vmem:[%s4066_s4 + $0x2f8] sm:$0xff] }
 0x20c   :  { %664 = vmatpush1.msra.mxu0 %v2766_v50  ;;  %735 = vmatpush1.msra.mxu1 %v2771_v39  ;;  %4230 = vst [vmem:[#allocation24_spill] sm:$0xff] %v2802_v54  ;;  %4231 = vst [vmem:[#allocation25_spill] sm:$0xff] %v2807_v38  ;;  %v2814_v50 = vld [vmem:[%s4066_s4 + $0x2e0] sm:$0xff]  ;;  %v2819_v39 = vld [vmem:[%s4066_s4 + $0x2f0] sm:$0xff] }
 0x20d   :  { %665 = vmatprep.subr.mxu0 %v2778_v1  ;;  %736 = vmatprep.subr.mxu1 %v2783_v0  ;;  %4232 = vst [vmem:[#allocation26_spill] sm:$0xff] %v2814_v50  ;;  %4233 = vst [vmem:[#allocation27_spill] sm:$0xff] %v2819_v39  ;;  %v2826_v1 = vld [vmem:[%s4066_s4 + $0x2a8] sm:$0xff]  ;;  %v2831_v0 = vld [vmem:[%s4066_s4 + $0x2b8] sm:$0xff] }
 0x20e   :  { %666 = vmatpush1.msra.mxu0 %v2790_v53  ;;  %737 = vmatpush1.msra.mxu1 %v2795_v60  ;;  %4234 = vst [vmem:[#allocation28_spill] sm:$0xff] %v2826_v1  ;;  %4235 = vst [vmem:[#allocation29_spill] sm:$0xff] %v2831_v0  ;;  %v2838_v53 = vld [vmem:[%s4066_s4 + $0x2a0] sm:$0xff]  ;;  %v2843_v60 = vld [vmem:[%s4066_s4 + $0x2b0] sm:$0xff] }
 0x20f   :  { %667 = vmatprep.subr.mxu0 %v2802_v54  ;;  %738 = vmatprep.subr.mxu1 %v2807_v38  ;;  %4236 = vst [vmem:[#allocation30_spill] sm:$0xff] %v2838_v53  ;;  %4237 = vst [vmem:[#allocation31_spill] sm:$0xff] %v2843_v60  ;;  %v2850_v54 = vld [vmem:[%s4066_s4 + $0x268] sm:$0xff]  ;;  %v2855_v38 = vld [vmem:[%s4066_s4 + $0x278] sm:$0xff] }
 0x210   :  { %668 = vmatpush1.msra.mxu0 %v2814_v50  ;;  %739 = vmatpush1.msra.mxu1 %v2819_v39  ;;  %4238 = vst [vmem:[#allocation32_spill] sm:$0xff] %v2850_v54  ;;  %4239 = vst [vmem:[#allocation33_spill] sm:$0xff] %v2855_v38  ;;  %v2862_v50 = vld [vmem:[%s4066_s4 + $0x260] sm:$0xff]  ;;  %v2867_v39 = vld [vmem:[%s4066_s4 + $0x270] sm:$0xff] }
 0x211   :  { %669 = vmatprep.subr.mxu0 %v2826_v1  ;;  %740 = vmatprep.subr.mxu1 %v2831_v0  ;;  %4240 = vst [vmem:[#allocation34_spill] sm:$0xff] %v2862_v50  ;;  %4241 = vst [vmem:[#allocation35_spill] sm:$0xff] %v2867_v39  ;;  %v2874_v1 = vld [vmem:[%s4066_s4 + $0x228] sm:$0xff]  ;;  %v2879_v0 = vld [vmem:[%s4066_s4 + $0x238] sm:$0xff] }
 0x212   :  { %670 = vmatpush1.msra.mxu0 %v2838_v53  ;;  %741 = vmatpush1.msra.mxu1 %v2843_v60  ;;  %4242 = vst [vmem:[#allocation36_spill] sm:$0xff] %v2874_v1  ;;  %4243 = vst [vmem:[#allocation37_spill] sm:$0xff] %v2879_v0  ;;  %v2886_v53 = vld [vmem:[%s4066_s4 + $0x220] sm:$0xff]  ;;  %v2891_v60 = vld [vmem:[%s4066_s4 + $0x230] sm:$0xff] }
 0x213   :  { %671 = vmatprep.subr.mxu0 %v2850_v54  ;;  %742 = vmatprep.subr.mxu1 %v2855_v38  ;;  %4244 = vst [vmem:[#allocation38_spill] sm:$0xff] %v2886_v53  ;;  %4245 = vst [vmem:[#allocation39_spill] sm:$0xff] %v2891_v60  ;;  %v2898_v54 = vld [vmem:[%s4066_s4 + $0x1e8] sm:$0xff]  ;;  %v2903_v38 = vld [vmem:[%s4066_s4 + $0x1f8] sm:$0xff] }
 0x214   :  { %672 = vmatpush1.msra.mxu0 %v2862_v50  ;;  %743 = vmatpush1.msra.mxu1 %v2867_v39  ;;  %4246 = vst [vmem:[#allocation40_spill] sm:$0xff] %v2898_v54  ;;  %4247 = vst [vmem:[#allocation41_spill] sm:$0xff] %v2903_v38  ;;  %v2910_v50 = vld [vmem:[%s4066_s4 + $0x1e0] sm:$0xff]  ;;  %v2915_v39 = vld [vmem:[%s4066_s4 + $0x1f0] sm:$0xff] }
 0x215   :  { %673 = vmatprep.subr.mxu0 %v2874_v1  ;;  %744 = vmatprep.subr.mxu1 %v2879_v0  ;;  %4248 = vst [vmem:[#allocation42_spill] sm:$0xff] %v2910_v50  ;;  %4249 = vst [vmem:[#allocation43_spill] sm:$0xff] %v2915_v39  ;;  %v2922_v1 = vld [vmem:[%s4066_s4 + $0x1a8] sm:$0xff]  ;;  %v2927_v0 = vld [vmem:[%s4066_s4 + $0x1b8] sm:$0xff] }
 0x216   :  { %674 = vmatpush1.msra.mxu0 %v2886_v53  ;;  %745 = vmatpush1.msra.mxu1 %v2891_v60  ;;  %4250 = vst [vmem:[#allocation44_spill] sm:$0xff] %v2922_v1  ;;  %4251 = vst [vmem:[#allocation45_spill] sm:$0xff] %v2927_v0  ;;  %v2934_v53 = vld [vmem:[%s4066_s4 + $0x1a0] sm:$0xff]  ;;  %v2939_v60 = vld [vmem:[%s4066_s4 + $0x1b0] sm:$0xff] }
 0x217   :  { %675 = vmatprep.subr.mxu0 %v2898_v54  ;;  %746 = vmatprep.subr.mxu1 %v2903_v38  ;;  %4252 = vst [vmem:[#allocation46_spill] sm:$0xff] %v2934_v53  ;;  %4253 = vst [vmem:[#allocation47_spill] sm:$0xff] %v2939_v60  ;;  %v2946_v54 = vld [vmem:[%s4066_s4 + $0x168] sm:$0xff]  ;;  %v2951_v38 = vld [vmem:[%s4066_s4 + $0x178] sm:$0xff] }
 0x218   :  { %676 = vmatpush1.msra.mxu0 %v2910_v50  ;;  %747 = vmatpush1.msra.mxu1 %v2915_v39  ;;  %4254 = vst [vmem:[#allocation48_spill] sm:$0xff] %v2946_v54  ;;  %4255 = vst [vmem:[#allocation49_spill] sm:$0xff] %v2951_v38  ;;  %v2958_v50 = vld [vmem:[%s4066_s4 + $0x160] sm:$0xff]  ;;  %v2963_v39 = vld [vmem:[%s4066_s4 + $0x170] sm:$0xff] }
 0x219   :  { %677 = vmatprep.subr.mxu0 %v2922_v1  ;;  %748 = vmatprep.subr.mxu1 %v2927_v0  ;;  %4256 = vst [vmem:[#allocation50_spill] sm:$0xff] %v2958_v50  ;;  %4257 = vst [vmem:[#allocation51_spill] sm:$0xff] %v2963_v39  ;;  %v2970_v1 = vld [vmem:[%s4066_s4 + $0x128] sm:$0xff]  ;;  %v2975_v0 = vld [vmem:[%s4066_s4 + $0x138] sm:$0xff] }
 0x21a   :  { %678 = vmatpush1.msra.mxu0 %v2934_v53  ;;  %749 = vmatpush1.msra.mxu1 %v2939_v60  ;;  %4258 = vst [vmem:[#allocation52_spill] sm:$0xff] %v2970_v1  ;;  %4259 = vst [vmem:[#allocation53_spill] sm:$0xff] %v2975_v0  ;;  %v2982_v53 = vld [vmem:[%s4066_s4 + $0x120] sm:$0xff]  ;;  %v2987_v60 = vld [vmem:[%s4066_s4 + $0x130] sm:$0xff] }
 0x21b   :  { %679 = vmatprep.subr.mxu0 %v2946_v54  ;;  %750 = vmatprep.subr.mxu1 %v2951_v38  ;;  %4260 = vst [vmem:[#allocation54_spill] sm:$0xff] %v2982_v53  ;;  %4261 = vst [vmem:[#allocation55_spill] sm:$0xff] %v2987_v60  ;;  %v2994_v54 = vld [vmem:[%s4066_s4 + $0xe8] sm:$0xff]  ;;  %v2999_v38 = vld [vmem:[%s4066_s4 + $0xf8] sm:$0xff] }
 0x21c   :  { %680 = vmatpush1.msra.mxu0 %v2958_v50  ;;  %751 = vmatpush1.msra.mxu1 %v2963_v39  ;;  %4262 = vst [vmem:[#allocation56_spill] sm:$0xff] %v2994_v54  ;;  %4263 = vst [vmem:[#allocation57_spill] sm:$0xff] %v2999_v38  ;;  %v3006_v50 = vld [vmem:[%s4066_s4 + $0xe0] sm:$0xff]  ;;  %v3011_v39 = vld [vmem:[%s4066_s4 + $0xf0] sm:$0xff] }
 0x21d   :  { %681 = vmatprep.subr.mxu0 %v2970_v1  ;;  %752 = vmatprep.subr.mxu1 %v2975_v0  ;;  %4264 = vst [vmem:[#allocation58_spill] sm:$0xff] %v3006_v50  ;;  %4265 = vst [vmem:[#allocation59_spill] sm:$0xff] %v3011_v39  ;;  %v3018_v1 = vld [vmem:[%s4066_s4 + $0xa8] sm:$0xff]  ;;  %v3023_v0 = vld [vmem:[%s4066_s4 + $0xb8] sm:$0xff] }
 0x21e   :  { %682 = vmatpush1.msra.mxu0 %v2982_v53  ;;  %753 = vmatpush1.msra.mxu1 %v2987_v60  ;;  %4266 = vst [vmem:[#allocation60_spill] sm:$0xff] %v3018_v1  ;;  %4267 = vst [vmem:[#allocation61_spill] sm:$0xff] %v3023_v0  ;;  %v3030_v53 = vld [vmem:[%s4066_s4 + $0xa0] sm:$0xff]  ;;  %v3035_v60 = vld [vmem:[%s4066_s4 + $0xb0] sm:$0xff] }
 0x21f   :  { %683 = vmatprep.subr.mxu0 %v2994_v54  ;;  %754 = vmatprep.subr.mxu1 %v2999_v38  ;;  %4268 = vst [vmem:[#allocation62_spill] sm:$0xff] %v3030_v53  ;;  %4269 = vst [vmem:[#allocation63_spill] sm:$0xff] %v3035_v60  ;;  %v3042_v54 = vld [vmem:[%s4066_s4 + $0x68] sm:$0xff]  ;;  %v3047_v38 = vld [vmem:[%s4066_s4 + $0x78] sm:$0xff] }
 0x220   :  { %684 = vmatpush1.msra.mxu0 %v3006_v50  ;;  %755 = vmatpush1.msra.mxu1 %v3011_v39  ;;  %4270 = vst [vmem:[#allocation64_spill] sm:$0xff] %v3042_v54  ;;  %4271 = vst [vmem:[#allocation65_spill] sm:$0xff] %v3047_v38  ;;  %v3054_v50 = vld [vmem:[%s4066_s4 + $0x60] sm:$0xff]  ;;  %v3059_v39 = vld [vmem:[%s4066_s4 + $0x70] sm:$0xff] }
 0x221   :  { %685 = vmatprep.subr.mxu0 %v3018_v1  ;;  %756 = vmatprep.subr.mxu1 %v3023_v0  ;;  %4272 = vst [vmem:[#allocation66_spill] sm:$0xff] %v3054_v50  ;;  %4273 = vst [vmem:[#allocation67_spill] sm:$0xff] %v3059_v39  ;;  %v3066_v1 = vld [vmem:[%s4066_s4 + $0x28] sm:$0xff]  ;;  %v3071_v0 = vld [vmem:[%s4066_s4 + $0x38] sm:$0xff] }
 0x222   :  { %686 = vmatpush1.msra.mxu0 %v3030_v53  ;;  %757 = vmatpush1.msra.mxu1 %v3035_v60  ;;  %4274 = vst [vmem:[#allocation68_spill] sm:$0xff] %v3066_v1  ;;  %4275 = vst [vmem:[#allocation69_spill] sm:$0xff] %v3071_v0  ;;  %v3078_v53 = vld [vmem:[%s4066_s4 + $0x20] sm:$0xff]  ;;  %v3083_v60 = vld [vmem:[%s4066_s4 + $0x30] sm:$0xff] }
 0x223   :  { %687 = vmatprep.subr.mxu0 %v3042_v54  ;;  %758 = vmatprep.subr.mxu1 %v3047_v38  ;;  %4276 = vst [vmem:[#allocation70_spill] sm:$0xff] %v3078_v53  ;;  %4277 = vst [vmem:[#allocation71_spill] sm:$0xff] %v3083_v60  ;;  %v3090_v54 = vld [vmem:[%s4066_s4 + $0x7e8] sm:$0xff]  ;;  %v3095_v38 = vld [vmem:[%s4066_s4 + $0x7f8] sm:$0xff] }
 0x224   :  { %688 = vmatpush1.msra.mxu0 %v3054_v50  ;;  %759 = vmatpush1.msra.mxu1 %v3059_v39  ;;  %4278 = vst [vmem:[#allocation72_spill] sm:$0xff] %v3090_v54  ;;  %4279 = vst [vmem:[#allocation73_spill] sm:$0xff] %v3095_v38  ;;  %v3102_v50 = vld [vmem:[%s4066_s4 + $0x7e0] sm:$0xff]  ;;  %v3107_v39 = vld [vmem:[%s4066_s4 + $0x7f0] sm:$0xff] }
 0x225   :  { %689 = vmatprep.subr.mxu0 %v3066_v1  ;;  %760 = vmatprep.subr.mxu1 %v3071_v0  ;;  %4280 = vst [vmem:[#allocation74_spill] sm:$0xff] %v3102_v50  ;;  %4281 = vst [vmem:[#allocation75_spill] sm:$0xff] %v3107_v39  ;;  %v3114_v1 = vld [vmem:[%s4066_s4 + $0x7a8] sm:$0xff]  ;;  %v3119_v0 = vld [vmem:[%s4066_s4 + $0x7b8] sm:$0xff] }
 0x226   :  { %690 = vmatpush1.msra.mxu0 %v3078_v53  ;;  %761 = vmatpush1.msra.mxu1 %v3083_v60  ;;  %4282 = vst [vmem:[#allocation76_spill] sm:$0xff] %v3114_v1  ;;  %4283 = vst [vmem:[#allocation77_spill] sm:$0xff] %v3119_v0  ;;  %v3126_v53 = vld [vmem:[%s4066_s4 + $0x7a0] sm:$0xff]  ;;  %v3131_v60 = vld [vmem:[%s4066_s4 + $0x7b0] sm:$0xff] }
 0x227   :  { %691 = vmatprep.subr.mxu0 %v3090_v54  ;;  %762 = vmatprep.subr.mxu1 %v3095_v38  ;;  %4284 = vst [vmem:[#allocation78_spill] sm:$0xff] %v3126_v53  ;;  %4285 = vst [vmem:[#allocation79_spill] sm:$0xff] %v3131_v60  ;;  %v3138_v54 = vld [vmem:[%s4066_s4 + $0x768] sm:$0xff]  ;;  %v3143_v38 = vld [vmem:[%s4066_s4 + $0x778] sm:$0xff] }
 0x228   :  { %692 = vmatpush2.msra.mxu0 %v3102_v50  ;;  %763 = vmatpush2.msra.mxu1 %v3107_v39  ;;  %4286 = vst [vmem:[#allocation80_spill] sm:$0xff] %v3138_v54  ;;  %4287 = vst [vmem:[#allocation81_spill] sm:$0xff] %v3143_v38  ;;  %v3150_v50 = vld [vmem:[%s4066_s4 + $0x760] sm:$0xff]  ;;  %v3155_v39 = vld [vmem:[%s4066_s4 + $0x770] sm:$0xff] }
 0x229   :  { %693 = vmatprep.subr.mxu0 %v3114_v1  ;;  %764 = vmatprep.subr.mxu1 %v3119_v0  ;;  %4288 = vst [vmem:[#allocation82_spill] sm:$0xff] %v3150_v50  ;;  %4289 = vst [vmem:[#allocation83_spill] sm:$0xff] %v3155_v39  ;;  %v3162_v1 = vld [vmem:[%s4066_s4 + $0x728] sm:$0xff]  ;;  %v3167_v0 = vld [vmem:[%s4066_s4 + $0x738] sm:$0xff] }
 0x22a   :  { %694 = vmatpush2.msra.mxu0 %v3126_v53  ;;  %765 = vmatpush2.msra.mxu1 %v3131_v60  ;;  %4290 = vst [vmem:[#allocation84_spill] sm:$0xff] %v3162_v1  ;;  %4291 = vst [vmem:[#allocation85_spill] sm:$0xff] %v3167_v0  ;;  %v3174_v53 = vld [vmem:[%s4066_s4 + $0x720] sm:$0xff]  ;;  %v3179_v60 = vld [vmem:[%s4066_s4 + $0x730] sm:$0xff] }
 0x22b   :  { %695 = vmatprep.subr.mxu0 %v3138_v54  ;;  %766 = vmatprep.subr.mxu1 %v3143_v38  ;;  %4292 = vst [vmem:[#allocation86_spill] sm:$0xff] %v3174_v53  ;;  %4293 = vst [vmem:[#allocation87_spill] sm:$0xff] %v3179_v60  ;;  %v3186_v54 = vld [vmem:[%s4066_s4 + $0x6e8] sm:$0xff]  ;;  %v3191_v38 = vld [vmem:[%s4066_s4 + $0x6f8] sm:$0xff] }
 0x22c   :  { %696 = vmatpush2.msra.mxu0 %v3150_v50  ;;  %767 = vmatpush2.msra.mxu1 %v3155_v39  ;;  %4294 = vst [vmem:[#allocation88_spill] sm:$0xff] %v3186_v54  ;;  %4295 = vst [vmem:[#allocation89_spill] sm:$0xff] %v3191_v38  ;;  %v3198_v50 = vld [vmem:[%s4066_s4 + $0x6e0] sm:$0xff]  ;;  %v3203_v39 = vld [vmem:[%s4066_s4 + $0x6f0] sm:$0xff] }
 0x22d   :  { %697 = vmatprep.subr.mxu0 %v3162_v1  ;;  %768 = vmatprep.subr.mxu1 %v3167_v0  ;;  %4296 = vst [vmem:[#allocation90_spill] sm:$0xff] %v3198_v50  ;;  %4297 = vst [vmem:[#allocation91_spill] sm:$0xff] %v3203_v39  ;;  %v3210_v1 = vld [vmem:[%s4066_s4 + $0x6a8] sm:$0xff]  ;;  %v3215_v0 = vld [vmem:[%s4066_s4 + $0x6b8] sm:$0xff] }
 0x22e   :  { %698 = vmatpush2.msra.mxu0 %v3174_v53  ;;  %769 = vmatpush2.msra.mxu1 %v3179_v60  ;;  %4298 = vst [vmem:[#allocation92_spill] sm:$0xff] %v3210_v1  ;;  %4299 = vst [vmem:[#allocation93_spill] sm:$0xff] %v3215_v0  ;;  %v3222_v53 = vld [vmem:[%s4066_s4 + $0x6a0] sm:$0xff]  ;;  %v3227_v60 = vld [vmem:[%s4066_s4 + $0x6b0] sm:$0xff] }
 0x22f   :  { %699 = vmatprep.subr.mxu0 %v3186_v54  ;;  %770 = vmatprep.subr.mxu1 %v3191_v38  ;;  %4300 = vst [vmem:[#allocation94_spill] sm:$0xff] %v3222_v53  ;;  %4301 = vst [vmem:[#allocation95_spill] sm:$0xff] %v3227_v60  ;;  %v3234_v54 = vld [vmem:[%s4066_s4 + $0x668] sm:$0xff]  ;;  %v3239_v38 = vld [vmem:[%s4066_s4 + $0x678] sm:$0xff] }
 0x230   :  { %700 = vmatpush2.msra.mxu0 %v3198_v50  ;;  %771 = vmatpush2.msra.mxu1 %v3203_v39  ;;  %4302 = vst [vmem:[#allocation96_spill] sm:$0xff] %v3234_v54  ;;  %4303 = vst [vmem:[#allocation97_spill] sm:$0xff] %v3239_v38  ;;  %v3246_v50 = vld [vmem:[%s4066_s4 + $0x660] sm:$0xff]  ;;  %v3251_v39 = vld [vmem:[%s4066_s4 + $0x670] sm:$0xff] }
 0x231   :  { %701 = vmatprep.subr.mxu0 %v3210_v1  ;;  %772 = vmatprep.subr.mxu1 %v3215_v0  ;;  %4304 = vst [vmem:[#allocation98_spill] sm:$0xff] %v3246_v50  ;;  %4305 = vst [vmem:[#allocation99_spill] sm:$0xff] %v3251_v39  ;;  %v3258_v1 = vld [vmem:[%s4066_s4 + $0x628] sm:$0xff]  ;;  %v3263_v0 = vld [vmem:[%s4066_s4 + $0x638] sm:$0xff] }
 0x232   :  { %702 = vmatpush2.msra.mxu0 %v3222_v53  ;;  %773 = vmatpush2.msra.mxu1 %v3227_v60  ;;  %4306 = vst [vmem:[#allocation100_spill] sm:$0xff] %v3258_v1  ;;  %4307 = vst [vmem:[#allocation101_spill] sm:$0xff] %v3263_v0  ;;  %v3270_v53 = vld [vmem:[%s4066_s4 + $0x620] sm:$0xff]  ;;  %v3275_v60 = vld [vmem:[%s4066_s4 + $0x630] sm:$0xff] }
 0x233   :  { %703 = vmatprep.subr.mxu0 %v3234_v54  ;;  %774 = vmatprep.subr.mxu1 %v3239_v38  ;;  %4308 = vst [vmem:[#allocation102_spill] sm:$0xff] %v3270_v53  ;;  %4309 = vst [vmem:[#allocation103_spill] sm:$0xff] %v3275_v60  ;;  %v3282_v54 = vld [vmem:[%s4066_s4 + $0x5e8] sm:$0xff]  ;;  %v3287_v38 = vld [vmem:[%s4066_s4 + $0x5f8] sm:$0xff] }
 0x234   :  { %704 = vmatpush2.msra.mxu0 %v3246_v50  ;;  %775 = vmatpush2.msra.mxu1 %v3251_v39  ;;  %4310 = vst [vmem:[#allocation104_spill] sm:$0xff] %v3282_v54  ;;  %4311 = vst [vmem:[#allocation105_spill] sm:$0xff] %v3287_v38  ;;  %v3294_v50 = vld [vmem:[%s4066_s4 + $0x5e0] sm:$0xff]  ;;  %v3299_v39 = vld [vmem:[%s4066_s4 + $0x5f0] sm:$0xff] }
 0x235   :  { %705 = vmatprep.subr.mxu0 %v3258_v1  ;;  %776 = vmatprep.subr.mxu1 %v3263_v0  ;;  %4312 = vst [vmem:[#allocation106_spill] sm:$0xff] %v3294_v50  ;;  %4313 = vst [vmem:[#allocation107_spill] sm:$0xff] %v3299_v39  ;;  %v3306_v1 = vld [vmem:[%s4066_s4 + $0x5a8] sm:$0xff]  ;;  %v3311_v0 = vld [vmem:[%s4066_s4 + $0x5b8] sm:$0xff] }
 0x236   :  { %706 = vmatpush2.msra.mxu0 %v3270_v53  ;;  %777 = vmatpush2.msra.mxu1 %v3275_v60  ;;  %4314 = vst [vmem:[#allocation108_spill] sm:$0xff] %v3306_v1  ;;  %4315 = vst [vmem:[#allocation109_spill] sm:$0xff] %v3311_v0  ;;  %v3318_v53 = vld [vmem:[%s4066_s4 + $0x5a0] sm:$0xff]  ;;  %v3323_v60 = vld [vmem:[%s4066_s4 + $0x5b0] sm:$0xff] }
 0x237   :  { %707 = vmatprep.subr.mxu0 %v3282_v54  ;;  %778 = vmatprep.subr.mxu1 %v3287_v38  ;;  %4316 = vst [vmem:[#allocation110_spill] sm:$0xff] %v3318_v53  ;;  %4317 = vst [vmem:[#allocation111_spill] sm:$0xff] %v3323_v60  ;;  %v3330_v54 = vld [vmem:[%s4066_s4 + $0x568] sm:$0xff]  ;;  %v3335_v38 = vld [vmem:[%s4066_s4 + $0x578] sm:$0xff] }
 0x238   :  { %708 = vmatpush2.msra.mxu0 %v3294_v50  ;;  %779 = vmatpush2.msra.mxu1 %v3299_v39  ;;  %4318 = vst [vmem:[#allocation112_spill] sm:$0xff] %v3330_v54  ;;  %4319 = vst [vmem:[#allocation113_spill] sm:$0xff] %v3335_v38  ;;  %v3342_v50 = vld [vmem:[%s4066_s4 + $0x560] sm:$0xff]  ;;  %v3347_v39 = vld [vmem:[%s4066_s4 + $0x570] sm:$0xff] }
 0x239   :  { %709 = vmatprep.subr.mxu0 %v3306_v1  ;;  %780 = vmatprep.subr.mxu1 %v3311_v0  ;;  %4320 = vst [vmem:[#allocation114_spill] sm:$0xff] %v3342_v50  ;;  %4321 = vst [vmem:[#allocation115_spill] sm:$0xff] %v3347_v39  ;;  %v3354_v1 = vld [vmem:[%s4066_s4 + $0x528] sm:$0xff]  ;;  %v3359_v0 = vld [vmem:[%s4066_s4 + $0x538] sm:$0xff] }
 0x23a   :  { %710 = vmatpush2.msra.mxu0 %v3318_v53  ;;  %781 = vmatpush2.msra.mxu1 %v3323_v60  ;;  %4322 = vst [vmem:[#allocation116_spill] sm:$0xff] %v3354_v1  ;;  %4323 = vst [vmem:[#allocation117_spill] sm:$0xff] %v3359_v0  ;;  %v3366_v53 = vld [vmem:[%s4066_s4 + $0x520] sm:$0xff]  ;;  %v3371_v60 = vld [vmem:[%s4066_s4 + $0x530] sm:$0xff] }
 0x23b   :  { %711 = vmatprep.subr.mxu0 %v3330_v54  ;;  %782 = vmatprep.subr.mxu1 %v3335_v38  ;;  %4324 = vst [vmem:[#allocation118_spill] sm:$0xff] %v3366_v53  ;;  %4325 = vst [vmem:[#allocation119_spill] sm:$0xff] %v3371_v60  ;;  %v3378_v54 = vld [vmem:[%s4066_s4 + $0x4e8] sm:$0xff]  ;;  %v3383_v38 = vld [vmem:[%s4066_s4 + $0x4f8] sm:$0xff] }
 0x23c   :  { %712 = vmatpush2.msra.mxu0 %v3342_v50  ;;  %783 = vmatpush2.msra.mxu1 %v3347_v39  ;;  %4326 = vst [vmem:[#allocation120_spill] sm:$0xff] %v3378_v54  ;;  %4327 = vst [vmem:[#allocation121_spill] sm:$0xff] %v3383_v38  ;;  %v3390_v50 = vld [vmem:[%s4066_s4 + $0x4e0] sm:$0xff]  ;;  %v3395_v39 = vld [vmem:[%s4066_s4 + $0x4f0] sm:$0xff] }
 0x23d   :  { %713 = vmatprep.subr.mxu0 %v3354_v1  ;;  %784 = vmatprep.subr.mxu1 %v3359_v0  ;;  %4328 = vst [vmem:[#allocation122_spill] sm:$0xff] %v3390_v50  ;;  %4329 = vst [vmem:[#allocation123_spill] sm:$0xff] %v3395_v39  ;;  %v3402_v1 = vld [vmem:[%s4066_s4 + $0x4a8] sm:$0xff]  ;;  %v3407_v0 = vld [vmem:[%s4066_s4 + $0x4b8] sm:$0xff] }
 0x23e   :  { %714 = vmatpush2.msra.mxu0 %v3366_v53  ;;  %785 = vmatpush2.msra.mxu1 %v3371_v60  ;;  %4330 = vst [vmem:[#allocation124_spill] sm:$0xff] %v3402_v1  ;;  %4331 = vst [vmem:[#allocation125_spill] sm:$0xff] %v3407_v0  ;;  %v3414_v53 = vld [vmem:[%s4066_s4 + $0x4a0] sm:$0xff]  ;;  %v3419_v60 = vld [vmem:[%s4066_s4 + $0x4b0] sm:$0xff] }
 0x23f   :  { %715 = vmatprep.subr.mxu0 %v3378_v54  ;;  %786 = vmatprep.subr.mxu1 %v3383_v38  ;;  %4332 = vst [vmem:[#allocation126_spill] sm:$0xff] %v3414_v53  ;;  %4333 = vst [vmem:[#allocation127_spill] sm:$0xff] %v3419_v60  ;;  %v3426_v54 = vld [vmem:[%s4066_s4 + $0x468] sm:$0xff]  ;;  %v3431_v38 = vld [vmem:[%s4066_s4 + $0x478] sm:$0xff] }
 0x240   :  { %716 = vmatpush2.msra.mxu0 %v3390_v50  ;;  %787 = vmatpush2.msra.mxu1 %v3395_v39  ;;  %4334 = vst [vmem:[#allocation128_spill] sm:$0xff] %v3426_v54  ;;  %4335 = vst [vmem:[#allocation129_spill] sm:$0xff] %v3431_v38  ;;  %v3438_v50 = vld [vmem:[%s4066_s4 + $0x460] sm:$0xff]  ;;  %v3443_v39 = vld [vmem:[%s4066_s4 + $0x470] sm:$0xff] }
 0x241   :  { %717 = vmatprep.subr.mxu0 %v3402_v1  ;;  %788 = vmatprep.subr.mxu1 %v3407_v0  ;;  %4336 = vst [vmem:[#allocation130_spill] sm:$0xff] %v3438_v50  ;;  %4337 = vst [vmem:[#allocation131_spill] sm:$0xff] %v3443_v39  ;;  %v3450_v1 = vld [vmem:[%s4066_s4 + $0x428] sm:$0xff]  ;;  %v3455_v0 = vld [vmem:[%s4066_s4 + $0x438] sm:$0xff] }
 0x242   :  { %718 = vmatpush2.msra.mxu0 %v3414_v53  ;;  %789 = vmatpush2.msra.mxu1 %v3419_v60  ;;  %4338 = vst [vmem:[#allocation132_spill] sm:$0xff] %v3455_v0  ;;  %v3462_v53 = vld [vmem:[%s4066_s4 + $0x420] sm:$0xff]  ;;  %v3467_v60 = vld [vmem:[%s4066_s4 + $0x430] sm:$0xff] }
 0x243   :  { %719 = vmatprep.subr.mxu0 %v3426_v54  ;;  %790 = vmatprep.subr.mxu1 %v3431_v38  ;;  %4339 = vst [vmem:[#allocation133_spill] sm:$0xff] %v3462_v53  ;;  %4340 = vst [vmem:[#allocation134_spill] sm:$0xff] %v3467_v60  ;;  %v4341_v38 = vmov 0.0  }
 0x244   :  { %720 = vmatpush2.msra.mxu0 %v3438_v50  ;;  %791 = vmatpush2.msra.mxu1 %v3443_v39 }
 0x245   :  { %721 = vmatprep.subr.mxu0 %v3450_v1  ;;  %792 = vmatprep.subr.mxu1 %v3455_v0  ;;  %v3482_v0 = vld [vmem:[%s4069_s5] sm:$0xf] }
 0x246   :  { %722 = vmatpush2.msra.mxu0 %v3462_v53  ;;  %793 = vmatpush2.msra.mxu1 %v3467_v60 }
 0x247   :  { %724 = vmatmul.mubr.f32.vlgmr.msra.gmra.mxu0 %v2715_v51  ;;  %795 = vmatmul.mubr.f32.vlgmr.msra.gmra.mxu1 %v2715_v51  ;;  %v246_v51 = vmul.f32 %v2705_v3, %v2130_v47  ;;  %v1883_v47 = vld [vmem:[%s4066_s4 + $0x3c8] sm:$0xff] }
 0x248   :  { %869 = vmatprep.mubr.f32.mxu0 %v4341_v38  ;;  %940 = vmatprep.mubr.f32.mxu1 %v4341_v38 }
 0x2c6   :  { %v583_v54 = vpop.f32.mrf.mxu0  ;;  %v654_v50 = vpop.f32.mrf.mxu1 }
 0x2c8   :  { %v585_v52 = vpop.f32.mrf.mxu0  ;;  %v656_v39 = vpop.f32.mrf.mxu1 }
 0x2c9   :  { %835 = vmatprep.subr.mxu0 %v585_v52  ;;  %906 = vmatprep.subr.mxu1 %v656_v39  ;;  %v255_v52 = vadd.f32 %v2711_v48, %v246_v51  ;;  %v1884_v51 = vld [vmem:[%s4066_s4 + $0x3d8] sm:$0xff] }
 0x2ca   :  { %836 = vmatpush1.msra.mxu0 %v583_v54  ;;  %907 = vmatpush1.msra.mxu1 %v654_v50 }
 0x2cb   :  { %1863 = vmatmul.mubr.msk.f32.vlgmr.msra.gmra.mxu0 %vm801_vm1, %v3482_v0  ;;  %1864 = vmatmul.mubr.msk.f32.vlgmr.msra.gmra.mxu1 %vm801_vm1, %v3482_v0  ;;  %v3493_v50 = vmax.f32 %v255_v52, 0.0  ;;  %v1887_v52 = vld [vmem:[%s4066_s4 + $0x388] sm:$0xff] }
 0x2cc   :  { %1011 = vmatprep.mubr.f32.mxu0 %v4341_v38  ;;  %1082 = vmatprep.mubr.f32.mxu1 %v4341_v38 }
 0x307   :  { %v725_v60 = vpop.f32.mrf.mxu0  ;;  %v796_v53 = vpop.f32.mrf.mxu1 }
 0x309   :  { %v727_v39 = vpop.f32.mrf.mxu0  ;;  %v798_v54 = vpop.f32.mrf.mxu1 }
 0x30a   :  { %977 = vmatprep.subr.mxu0 %v727_v39  ;;  %1048 = vmatprep.subr.mxu1 %v798_v54  ;;  %v1888_v39 = vld [vmem:[%s4066_s4 + $0x398] sm:$0xff]  ;;  %v1889_v54 = vld [vmem:[%s4066_s4 + $0x380] sm:$0xff] }
 0x30b   :  { %978 = vmatpush1.msra.mxu0 %v725_v60  ;;  %1049 = vmatpush1.msra.mxu1 %v796_v53  ;;  %v1885_v53 = vld [vmem:[%s4066_s4 + $0x3c0] sm:$0xff]  ;;  %v1886_v60 = vld [vmem:[%s4066_s4 + $0x3d0] sm:$0xff] }
 0x30c   :  { %1865 = vmatmul.mubr.msk.f32.vlgmr.msra.gmra.mxu0 %vm801_vm1, %v3482_v0  ;;  %1866 = vmatmul.mubr.msk.f32.vlgmr.msra.gmra.mxu1 %vm801_vm1, %v3482_v0 }
 0x30d   :  { %1134 = vmatprep.subr.mxu0 %v1883_v47  ;;  %1205 = vmatprep.subr.mxu1 %v1884_v51  ;;  %v1890_v47 = vld [vmem:[%s4066_s4 + $0x390] sm:$0xff]  ;;  %v1891_v51 = vld [vmem:[%s4066_s4 + $0x348] sm:$0xff] }
 0x30e   :  { %1135 = vmatpush1.msra.mxu0 %v1885_v53  ;;  %1198 = vmatprep.mubr.f32.mxu0 %v3493_v50  ;;  %v1892_v53 = vld [vmem:[%s4066_s4 + $0x358] sm:$0xff] }
 0x30f   :  { %1206 = vmatpush1.msra.mxu1 %v1886_v60  ;;  %1269 = vmatprep.mubr.f32.mxu1 %v3493_v50  ;;  %v1893_v60 = vld [vmem:[%s4066_s4 + $0x340] sm:$0xff] }
 0x310   :  { %1136 = vmatprep.subr.mxu0 %v1887_v52  ;;  %1207 = vmatprep.subr.mxu1 %v1888_v39  ;;  %v1894_v52 = vld [vmem:[%s4066_s4 + $0x350] sm:$0xff]  ;;  %v1895_v39 = vld [vmem:[%s4066_s4 + $0x308] sm:$0xff] }
 0x311   :  { %1137 = vmatpush1.msra.mxu0 %v1889_v54  ;;  %1208 = vmatpush1.msra.mxu1 %v1890_v47  ;;  %v1896_v54 = vld [vmem:[%s4066_s4 + $0x318] sm:$0xff]  ;;  %v1897_v47 = vld [vmem:[%s4066_s4 + $0x300] sm:$0xff] }
 0x312   :  { %1138 = vmatprep.subr.mxu0 %v1891_v51  ;;  %1209 = vmatprep.subr.mxu1 %v1892_v53  ;;  %v1898_v51 = vld [vmem:[%s4066_s4 + $0x310] sm:$0xff]  ;;  %v1899_v53 = vld [vmem:[%s4066_s4 + $0x2c8] sm:$0xff] }
 0x313   :  { %1139 = vmatpush1.msra.mxu0 %v1893_v60  ;;  %1210 = vmatpush1.msra.mxu1 %v1894_v52  ;;  %v1900_v60 = vld [vmem:[%s4066_s4 + $0x2d8] sm:$0xff]  ;;  %v1901_v52 = vld [vmem:[%s4066_s4 + $0x2c0] sm:$0xff] }
 0x314   :  { %1140 = vmatprep.subr.mxu0 %v1895_v39  ;;  %1211 = vmatprep.subr.mxu1 %v1896_v54  ;;  %v1902_v39 = vld [vmem:[%s4066_s4 + $0x2d0] sm:$0xff]  ;;  %v1903_v54 = vld [vmem:[%s4066_s4 + $0x288] sm:$0xff] }
 0x315   :  { %1141 = vmatpush1.msra.mxu0 %v1897_v47  ;;  %1212 = vmatpush1.msra.mxu1 %v1898_v51  ;;  %v1904_v47 = vld [vmem:[%s4066_s4 + $0x298] sm:$0xff]  ;;  %v1905_v51 = vld [vmem:[%s4066_s4 + $0x280] sm:$0xff] }
 0x316   :  { %1142 = vmatprep.subr.mxu0 %v1899_v53  ;;  %1213 = vmatprep.subr.mxu1 %v1900_v60  ;;  %v1906_v53 = vld [vmem:[%s4066_s4 + $0x290] sm:$0xff]  ;;  %v1907_v60 = vld [vmem:[%s4066_s4 + $0x248] sm:$0xff] }
 0x317   :  { %1143 = vmatpush1.msra.mxu0 %v1901_v52  ;;  %1214 = vmatpush1.msra.mxu1 %v1902_v39  ;;  %v1908_v52 = vld [vmem:[%s4066_s4 + $0x258] sm:$0xff]  ;;  %v1909_v39 = vld [vmem:[%s4066_s4 + $0x240] sm:$0xff] }
 0x318   :  { %1144 = vmatprep.subr.mxu0 %v1903_v54  ;;  %1215 = vmatprep.subr.mxu1 %v1904_v47  ;;  %v1910_v54 = vld [vmem:[%s4066_s4 + $0x250] sm:$0xff]  ;;  %v1911_v47 = vld [vmem:[%s4066_s4 + $0x208] sm:$0xff] }
 0x319   :  { %1145 = vmatpush1.msra.mxu0 %v1905_v51  ;;  %1216 = vmatpush1.msra.mxu1 %v1906_v53  ;;  %v1912_v51 = vld [vmem:[%s4066_s4 + $0x218] sm:$0xff]  ;;  %v1913_v53 = vld [vmem:[%s4066_s4 + $0x200] sm:$0xff] }
 0x31a   :  { %1146 = vmatprep.subr.mxu0 %v1907_v60  ;;  %1217 = vmatprep.subr.mxu1 %v1908_v52  ;;  %v1914_v60 = vld [vmem:[%s4066_s4 + $0x210] sm:$0xff]  ;;  %v1915_v52 = vld [vmem:[%s4066_s4 + $0x1c8] sm:$0xff] }
 0x31b   :  { %1147 = vmatpush1.msra.mxu0 %v1909_v39  ;;  %1218 = vmatpush1.msra.mxu1 %v1910_v54  ;;  %v1916_v39 = vld [vmem:[%s4066_s4 + $0x1d8] sm:$0xff]  ;;  %v1917_v54 = vld [vmem:[%s4066_s4 + $0x1c0] sm:$0xff] }
 0x31c   :  { %1148 = vmatprep.subr.mxu0 %v1911_v47  ;;  %1219 = vmatprep.subr.mxu1 %v1912_v51  ;;  %v1918_v47 = vld [vmem:[%s4066_s4 + $0x1d0] sm:$0xff]  ;;  %v1919_v51 = vld [vmem:[%s4066_s4 + $0x188] sm:$0xff] }
 0x31d   :  { %1149 = vmatpush1.msra.mxu0 %v1913_v53  ;;  %1220 = vmatpush1.msra.mxu1 %v1914_v60  ;;  %v1920_v53 = vld [vmem:[%s4066_s4 + $0x198] sm:$0xff]  ;;  %v1921_v60 = vld [vmem:[%s4066_s4 + $0x180] sm:$0xff] }
 0x31e   :  { %1150 = vmatprep.subr.mxu0 %v1915_v52  ;;  %1221 = vmatprep.subr.mxu1 %v1916_v39  ;;  %v1922_v52 = vld [vmem:[%s4066_s4 + $0x190] sm:$0xff]  ;;  %v1923_v39 = vld [vmem:[%s4066_s4 + $0x148] sm:$0xff] }
 0x31f   :  { %1151 = vmatpush1.msra.mxu0 %v1917_v54  ;;  %1222 = vmatpush1.msra.mxu1 %v1918_v47  ;;  %v1924_v54 = vld [vmem:[%s4066_s4 + $0x158] sm:$0xff]  ;;  %v1925_v47 = vld [vmem:[%s4066_s4 + $0x140] sm:$0xff] }
 0x320   :  { %1152 = vmatprep.subr.mxu0 %v1919_v51  ;;  %1223 = vmatprep.subr.mxu1 %v1920_v53  ;;  %v1926_v51 = vld [vmem:[%s4066_s4 + $0x150] sm:$0xff]  ;;  %v1927_v53 = vld [vmem:[%s4066_s4 + $0x108] sm:$0xff] }
 0x321   :  { %1153 = vmatpush1.msra.mxu0 %v1921_v60  ;;  %1224 = vmatpush1.msra.mxu1 %v1922_v52  ;;  %v1928_v60 = vld [vmem:[%s4066_s4 + $0x118] sm:$0xff]  ;;  %v1929_v52 = vld [vmem:[%s4066_s4 + $0x100] sm:$0xff] }
 0x322   :  { %1154 = vmatprep.subr.mxu0 %v1923_v39  ;;  %1225 = vmatprep.subr.mxu1 %v1924_v54  ;;  %v1930_v39 = vld [vmem:[%s4066_s4 + $0x110] sm:$0xff]  ;;  %v1931_v54 = vld [vmem:[%s4066_s4 + $0xc8] sm:$0xff] }
 0x323   :  { %1155 = vmatpush1.msra.mxu0 %v1925_v47  ;;  %1226 = vmatpush1.msra.mxu1 %v1926_v51  ;;  %v1932_v47 = vld [vmem:[%s4066_s4 + $0xd8] sm:$0xff]  ;;  %v1933_v51 = vld [vmem:[%s4066_s4 + $0xc0] sm:$0xff] }
 0x324   :  { %1156 = vmatprep.subr.mxu0 %v1927_v53  ;;  %1227 = vmatprep.subr.mxu1 %v1928_v60  ;;  %v1934_v53 = vld [vmem:[%s4066_s4 + $0xd0] sm:$0xff]  ;;  %v1935_v60 = vld [vmem:[%s4066_s4 + $0x88] sm:$0xff] }
 0x325   :  { %1157 = vmatpush1.msra.mxu0 %v1929_v52  ;;  %1228 = vmatpush1.msra.mxu1 %v1930_v39  ;;  %v1936_v52 = vld [vmem:[%s4066_s4 + $0x98] sm:$0xff]  ;;  %v1937_v39 = vld [vmem:[%s4066_s4 + $0x80] sm:$0xff] }
 0x326   :  { %1158 = vmatprep.subr.mxu0 %v1931_v54  ;;  %1229 = vmatprep.subr.mxu1 %v1932_v47  ;;  %v1938_v54 = vld [vmem:[%s4066_s4 + $0x90] sm:$0xff]  ;;  %v1939_v47 = vld [vmem:[%s4066_s4 + $0x48] sm:$0xff] }
 0x327   :  { %1159 = vmatpush1.msra.mxu0 %v1933_v51  ;;  %1230 = vmatpush1.msra.mxu1 %v1934_v53  ;;  %v1940_v51 = vld [vmem:[%s4066_s4 + $0x58] sm:$0xff]  ;;  %v1941_v53 = vld [vmem:[%s4066_s4 + $0x40] sm:$0xff] }
 0x328   :  { %1160 = vmatprep.subr.mxu0 %v1935_v60  ;;  %1231 = vmatprep.subr.mxu1 %v1936_v52  ;;  %v1942_v60 = vld [vmem:[%s4066_s4 + $0x50] sm:$0xff]  ;;  %v1943_v52 = vld [vmem:[%s4066_s4 + $0x8] sm:$0xff] }
 0x329   :  { %1161 = vmatpush1.msra.mxu0 %v1937_v39  ;;  %1232 = vmatpush1.msra.mxu1 %v1938_v54  ;;  %v1944_v39 = vld [vmem:[%s4066_s4 + $0x18] sm:$0xff]  ;;  %v1945_v54 = vld [vmem:[%s4066_s4] sm:$0xff] }
 0x32a   :  { %1162 = vmatprep.subr.mxu0 %v1939_v47  ;;  %1233 = vmatprep.subr.mxu1 %v1940_v51  ;;  %v1946_v47 = vld [vmem:[%s4066_s4 + $0x10] sm:$0xff]  ;;  %v1947_v51 = vld [vmem:[%s4066_s4 + $0x7c8] sm:$0xff] }
 0x32b   :  { %1163 = vmatpush1.msra.mxu0 %v1941_v53  ;;  %1234 = vmatpush1.msra.mxu1 %v1942_v60  ;;  %v1948_v53 = vld [vmem:[%s4066_s4 + $0x7d8] sm:$0xff]  ;;  %v1949_v60 = vld [vmem:[%s4066_s4 + $0x7c0] sm:$0xff] }
 0x32c   :  { %1164 = vmatprep.subr.mxu0 %v1943_v52  ;;  %1235 = vmatprep.subr.mxu1 %v1944_v39  ;;  %v1950_v52 = vld [vmem:[%s4066_s4 + $0x7d0] sm:$0xff]  ;;  %v1951_v39 = vld [vmem:[%s4066_s4 + $0x788] sm:$0xff] }
 0x32d   :  { %1165 = vmatpush1.msra.mxu0 %v1945_v54  ;;  %1236 = vmatpush1.msra.mxu1 %v1946_v47  ;;  %v1952_v54 = vld [vmem:[%s4066_s4 + $0x798] sm:$0xff]  ;;  %v1953_v47 = vld [vmem:[%s4066_s4 + $0x780] sm:$0xff] }
 0x32e   :  { %1166 = vmatprep.subr.mxu0 %v1947_v51  ;;  %1237 = vmatprep.subr.mxu1 %v1948_v53  ;;  %v1954_v51 = vld [vmem:[%s4066_s4 + $0x790] sm:$0xff]  ;;  %v4393_v53 = vld [vmem:[#allocation53_spill] sm:$0xff] }
 0x32f   :  { %1167 = vmatpush2.msra.mxu0 %v1949_v60  ;;  %1238 = vmatpush2.msra.mxu1 %v1950_v52  ;;  %v4394_v60 = vld [vmem:[#allocation54_spill] sm:$0xff]  ;;  %v4395_v52 = vld [vmem:[#allocation55_spill] sm:$0xff] }
 0x330   :  { %1168 = vmatprep.subr.mxu0 %v1951_v39  ;;  %1239 = vmatprep.subr.mxu1 %v1952_v54  ;;  %v4396_v39 = vld [vmem:[#allocation56_spill] sm:$0xff]  ;;  %v4397_v54 = vld [vmem:[#allocation57_spill] sm:$0xff] }
 0x331   :  { %1169 = vmatpush2.msra.mxu0 %v1953_v47  ;;  %1240 = vmatpush2.msra.mxu1 %v1954_v51  ;;  %v4398_v47 = vld [vmem:[#allocation58_spill] sm:$0xff]  ;;  %v4399_v51 = vld [vmem:[#allocation59_spill] sm:$0xff] }
 0x332   :  { %1170 = vmatprep.subr.mxu0 %v2354_v2  ;;  %1241 = vmatprep.subr.mxu1 %v2359_v4  ;;  %v245_v2 = vmul.f32 %v2705_v3, %v2119_v40  ;;  %v4342_v3 = vld [vmem:[#allocation2_spill] sm:$0xff]  ;;  %v4343_v40 = vld [vmem:[#allocation3_spill] sm:$0xff] }
 0x333   :  { %1171 = vmatpush2.msra.mxu0 %v2364_v5  ;;  %1242 = vmatpush2.msra.mxu1 %v2369_v6  ;;  %v4344_v6 = vld [vmem:[#allocation4_spill] sm:$0xff] }
 0x334   :  { %1172 = vmatprep.subr.mxu0 %v2374_v7  ;;  %1243 = vmatprep.subr.mxu1 %v2379_v8  ;;  %v254_v4 = vadd.f32 %v2711_v48, %v245_v2  ;;  %v4345_v7 = vld [vmem:[#allocation5_spill] sm:$0xff]  ;;  %v4346_v8 = vld [vmem:[#allocation6_spill] sm:$0xff]  ;;  %v4391_v48 = vld [vmem:[#allocation51_spill] sm:$0xff] }
 0x335   :  { %1173 = vmatpush2.msra.mxu0 %v2386_v9  ;;  %1244 = vmatpush2.msra.mxu1 %v2391_v10  ;;  %v4347_v9 = vld [vmem:[#allocation7_spill] sm:$0xff]  ;;  %v4348_v10 = vld [vmem:[#allocation8_spill] sm:$0xff] }
 0x336   :  { %1174 = vmatprep.subr.mxu0 %v2398_v11  ;;  %1245 = vmatprep.subr.mxu1 %v2403_v12  ;;  %v3772_v5 = vmax.f32 %v254_v4, 0.0  ;;  %v4349_v11 = vld [vmem:[#allocation9_spill] sm:$0xff]  ;;  %v4350_v12 = vld [vmem:[#allocation10_spill] sm:$0xff]  ;;  %v4400_v2 = vld [vmem:[#allocation60_spill] sm:$0xff] }
 0x337   :  { %1175 = vmatpush2.msra.mxu0 %v2410_v13  ;;  %1246 = vmatpush2.msra.mxu1 %v2415_v14  ;;  %v4351_v13 = vld [vmem:[#allocation11_spill] sm:$0xff]  ;;  %v4352_v14 = vld [vmem:[#allocation12_spill] sm:$0xff]  ;;  %v4401_v4 = vld [vmem:[#allocation61_spill] sm:$0xff] }
 0x338   :  { %1176 = vmatprep.subr.mxu0 %v2422_v15  ;;  %1247 = vmatprep.subr.mxu1 %v2427_v16  ;;  %v4353_v15 = vld [vmem:[#allocation13_spill] sm:$0xff]  ;;  %v4354_v16 = vld [vmem:[#allocation14_spill] sm:$0xff] }
 0x339   :  { %1177 = vmatpush2.msra.mxu0 %v2434_v17  ;;  %1248 = vmatpush2.msra.mxu1 %v2439_v18  ;;  %v4355_v17 = vld [vmem:[#allocation15_spill] sm:$0xff]  ;;  %v4356_v18 = vld [vmem:[#allocation16_spill] sm:$0xff] }
 0x33a   :  { %1178 = vmatprep.subr.mxu0 %v2446_v19  ;;  %1249 = vmatprep.subr.mxu1 %v2451_v20  ;;  %v4357_v19 = vld [vmem:[#allocation17_spill] sm:$0xff]  ;;  %v4358_v20 = vld [vmem:[#allocation18_spill] sm:$0xff] }
 0x33b   :  { %1179 = vmatpush2.msra.mxu0 %v2458_v21  ;;  %1250 = vmatpush2.msra.mxu1 %v2463_v22  ;;  %v4359_v21 = vld [vmem:[#allocation19_spill] sm:$0xff]  ;;  %v4360_v22 = vld [vmem:[#allocation20_spill] sm:$0xff] }
 0x33c   :  { %1180 = vmatprep.subr.mxu0 %v2470_v23  ;;  %1251 = vmatprep.subr.mxu1 %v2475_v24  ;;  %v4361_v23 = vld [vmem:[#allocation21_spill] sm:$0xff]  ;;  %v4362_v24 = vld [vmem:[#allocation22_spill] sm:$0xff] }
 0x33d   :  { %1181 = vmatpush2.msra.mxu0 %v2482_v25  ;;  %1252 = vmatpush2.msra.mxu1 %v2487_v26  ;;  %v4363_v25 = vld [vmem:[#allocation23_spill] sm:$0xff]  ;;  %v4364_v26 = vld [vmem:[#allocation24_spill] sm:$0xff] }
 0x33e   :  { %1182 = vmatprep.subr.mxu0 %v2494_v27  ;;  %1253 = vmatprep.subr.mxu1 %v2499_v28  ;;  %v4365_v27 = vld [vmem:[#allocation25_spill] sm:$0xff]  ;;  %v4366_v28 = vld [vmem:[#allocation26_spill] sm:$0xff] }
 0x33f   :  { %1183 = vmatpush2.msra.mxu0 %v2506_v29  ;;  %1254 = vmatpush2.msra.mxu1 %v2511_v30  ;;  %v4367_v29 = vld [vmem:[#allocation27_spill] sm:$0xff]  ;;  %v4368_v30 = vld [vmem:[#allocation28_spill] sm:$0xff] }
 0x340   :  { %1184 = vmatprep.subr.mxu0 %v2518_v31  ;;  %1255 = vmatprep.subr.mxu1 %v2523_v32  ;;  %v4369_v31 = vld [vmem:[#allocation29_spill] sm:$0xff]  ;;  %v4370_v32 = vld [vmem:[#allocation30_spill] sm:$0xff] }
 0x341   :  { %1185 = vmatpush2.msra.mxu0 %v2530_v33  ;;  %1256 = vmatpush2.msra.mxu1 %v2535_v34  ;;  %v4371_v33 = vld [vmem:[#allocation31_spill] sm:$0xff]  ;;  %v4372_v34 = vld [vmem:[#allocation32_spill] sm:$0xff] }
 0x342   :  { %1186 = vmatprep.subr.mxu0 %v2542_v35  ;;  %1257 = vmatprep.subr.mxu1 %v2547_v36  ;;  %v4373_v35 = vld [vmem:[#allocation33_spill] sm:$0xff]  ;;  %v4374_v36 = vld [vmem:[#allocation34_spill] sm:$0xff] }
 0x343   :  { %1187 = vmatpush2.msra.mxu0 %v2554_v37  ;;  %1258 = vmatpush2.msra.mxu1 %v2559_v41  ;;  %v4375_v37 = vld [vmem:[#allocation35_spill] sm:$0xff]  ;;  %v4376_v41 = vld [vmem:[#allocation36_spill] sm:$0xff] }
 0x344   :  { %1188 = vmatprep.subr.mxu0 %v2566_v42  ;;  %1259 = vmatprep.subr.mxu1 %v2571_v43  ;;  %v4377_v42 = vld [vmem:[#allocation37_spill] sm:$0xff]  ;;  %v4378_v43 = vld [vmem:[#allocation38_spill] sm:$0xff] }
 0x345   :  { %1189 = vmatpush2.msra.mxu0 %v2578_v44  ;;  %1260 = vmatpush2.msra.mxu1 %v2583_v45  ;;  %v4379_v44 = vld [vmem:[#allocation39_spill] sm:$0xff]  ;;  %v4380_v45 = vld [vmem:[#allocation40_spill] sm:$0xff] }
 0x346   :  { %1190 = vmatprep.subr.mxu0 %v2597_v55  ;;  %1261 = vmatprep.subr.mxu1 %v2602_v56  ;;  %v4381_v55 = vld [vmem:[#allocation41_spill] sm:$0xff]  ;;  %v4382_v56 = vld [vmem:[#allocation42_spill] sm:$0xff] }
 0x347   :  { %1191 = vmatpush2.msra.mxu0 %v2609_v57  ;;  %1262 = vmatpush2.msra.mxu1 %v2614_v58  ;;  %v4383_v57 = vld [vmem:[#allocation43_spill] sm:$0xff]  ;;  %v4384_v58 = vld [vmem:[#allocation44_spill] sm:$0xff] }
 0x348   :  { %1192 = vmatprep.subr.mxu0 %v2619_v59  ;;  %1263 = vmatprep.subr.mxu1 %v2626_v61  ;;  %v4385_v59 = vld [vmem:[#allocation45_spill] sm:$0xff]  ;;  %v4386_v61 = vld [vmem:[#allocation46_spill] sm:$0xff] }
 0x349   :  { %1193 = vmatpush2.msra.mxu0 %v2631_v62  ;;  %1264 = vmatpush2.msra.mxu1 %v2636_v63  ;;  %v4387_v62 = vld [vmem:[#allocation47_spill] sm:$0xff]  ;;  %v4388_v63 = vld [vmem:[#allocation48_spill] sm:$0xff] }
 0x34a   :  { %1194 = vmatprep.subr.mxu0 %v2648_v46  ;;  %1265 = vmatprep.subr.mxu1 %v2653_v49  ;;  %v4389_v46 = vld [vmem:[#allocation49_spill] sm:$0xff]  ;;  %v4390_v49 = vld [vmem:[#allocation50_spill] sm:$0xff] }
 0x34b   :  { %1195 = vmatpush2.msra.mxu0 %v4342_v3  ;;  %1266 = vmatpush2.msra.mxu1 %v4343_v40  ;;  %v4402_v3 = vld [vmem:[#allocation62_spill] sm:$0xff]  ;;  %v4403_v40 = vld [vmem:[#allocation63_spill] sm:$0xff] }
 0x34c   :  { %1196 = vmatprep.subr.mxu0 %v4344_v6  ;;  %1267 = vmatprep.subr.mxu1 %v4345_v7  ;;  %v4404_v6 = vld [vmem:[#allocation64_spill] sm:$0xff]  ;;  %v4405_v7 = vld [vmem:[#allocation65_spill] sm:$0xff] }
 0x34d   :  { %1197 = vmatpush2.msra.mxu0 %v4346_v8  ;;  %1268 = vmatpush2.msra.mxu1 %v4347_v9  ;;  %v4406_v8 = vld [vmem:[#allocation66_spill] sm:$0xff]  ;;  %v4407_v9 = vld [vmem:[#allocation67_spill] sm:$0xff] }
 0x34e   :  { %1199 = vmatmul.mubr.f32.vlgmr.msra.gmra.mxu0 %v3772_v5  ;;  %1270 = vmatmul.mubr.f32.vlgmr.msra.gmra.mxu1 %v3772_v5 }
 0x34f   :  { %1276 = vmatprep.subr.mxu0 %v4348_v10  ;;  %1347 = vmatprep.subr.mxu1 %v4349_v11  ;;  %v4408_v10 = vld [vmem:[#allocation68_spill] sm:$0xff]  ;;  %v4409_v11 = vld [vmem:[#allocation69_spill] sm:$0xff] }
 0x350   :  { %1277 = vmatpush1.msra.mxu0 %v4350_v12  ;;  %1340 = vmatprep.mubr.f32.mxu0 %v3493_v50  ;;  %v4410_v12 = vld [vmem:[#allocation70_spill] sm:$0xff] }
 0x351   :  { %1348 = vmatpush1.msra.mxu1 %v4351_v13  ;;  %1411 = vmatprep.mubr.f32.mxu1 %v3493_v50  ;;  %v4392_v50 = vld [vmem:[#allocation52_spill] sm:$0xff]  ;;  %v4411_v13 = vld [vmem:[#allocation71_spill] sm:$0xff] }
 0x352   :  { %1278 = vmatprep.subr.mxu0 %v4352_v14  ;;  %1349 = vmatprep.subr.mxu1 %v4353_v15  ;;  %v4412_v14 = vld [vmem:[#allocation72_spill] sm:$0xff]  ;;  %v4413_v15 = vld [vmem:[#allocation73_spill] sm:$0xff] }
 0x353   :  { %1279 = vmatpush1.msra.mxu0 %v4354_v16  ;;  %1350 = vmatpush1.msra.mxu1 %v4355_v17  ;;  %v4414_v16 = vld [vmem:[#allocation74_spill] sm:$0xff]  ;;  %v4415_v17 = vld [vmem:[#allocation75_spill] sm:$0xff] }
 0x354   :  { %1280 = vmatprep.subr.mxu0 %v4356_v18  ;;  %1351 = vmatprep.subr.mxu1 %v4357_v19  ;;  %v4416_v18 = vld [vmem:[#allocation76_spill] sm:$0xff]  ;;  %v4417_v19 = vld [vmem:[#allocation77_spill] sm:$0xff] }
 0x355   :  { %1281 = vmatpush1.msra.mxu0 %v4358_v20  ;;  %1352 = vmatpush1.msra.mxu1 %v4359_v21  ;;  %v4418_v20 = vld [vmem:[#allocation78_spill] sm:$0xff]  ;;  %v4419_v21 = vld [vmem:[#allocation79_spill] sm:$0xff] }
 0x356   :  { %1282 = vmatprep.subr.mxu0 %v4360_v22  ;;  %1353 = vmatprep.subr.mxu1 %v4361_v23  ;;  %v4420_v22 = vld [vmem:[#allocation80_spill] sm:$0xff]  ;;  %v4421_v23 = vld [vmem:[#allocation81_spill] sm:$0xff] }
 0x357   :  { %1283 = vmatpush1.msra.mxu0 %v4362_v24  ;;  %1354 = vmatpush1.msra.mxu1 %v4363_v25  ;;  %v4422_v24 = vld [vmem:[#allocation82_spill] sm:$0xff]  ;;  %v4423_v25 = vld [vmem:[#allocation83_spill] sm:$0xff] }
 0x358   :  { %1284 = vmatprep.subr.mxu0 %v4364_v26  ;;  %1355 = vmatprep.subr.mxu1 %v4365_v27  ;;  %v4424_v26 = vld [vmem:[#allocation84_spill] sm:$0xff]  ;;  %v4425_v27 = vld [vmem:[#allocation85_spill] sm:$0xff] }
 0x359   :  { %1285 = vmatpush1.msra.mxu0 %v4366_v28  ;;  %1356 = vmatpush1.msra.mxu1 %v4367_v29  ;;  %v4426_v28 = vld [vmem:[#allocation86_spill] sm:$0xff]  ;;  %v4427_v29 = vld [vmem:[#allocation87_spill] sm:$0xff] }
 0x35a   :  { %1286 = vmatprep.subr.mxu0 %v4368_v30  ;;  %1357 = vmatprep.subr.mxu1 %v4369_v31  ;;  %v4428_v30 = vld [vmem:[#allocation88_spill] sm:$0xff]  ;;  %v4429_v31 = vld [vmem:[#allocation89_spill] sm:$0xff] }
 0x35b   :  { %1287 = vmatpush1.msra.mxu0 %v4370_v32  ;;  %1358 = vmatpush1.msra.mxu1 %v4371_v33  ;;  %v4430_v32 = vld [vmem:[#allocation90_spill] sm:$0xff]  ;;  %v4431_v33 = vld [vmem:[#allocation91_spill] sm:$0xff] }
 0x35c   :  { %1288 = vmatprep.subr.mxu0 %v4372_v34  ;;  %1359 = vmatprep.subr.mxu1 %v4373_v35  ;;  %v4432_v34 = vld [vmem:[#allocation92_spill] sm:$0xff]  ;;  %v4433_v35 = vld [vmem:[#allocation93_spill] sm:$0xff] }
 0x35d   :  { %1289 = vmatpush1.msra.mxu0 %v4374_v36  ;;  %1360 = vmatpush1.msra.mxu1 %v4375_v37  ;;  %v4434_v36 = vld [vmem:[#allocation94_spill] sm:$0xff]  ;;  %v4435_v37 = vld [vmem:[#allocation95_spill] sm:$0xff] }
 0x35e   :  { %1290 = vmatprep.subr.mxu0 %v4376_v41  ;;  %1361 = vmatprep.subr.mxu1 %v4377_v42  ;;  %v4436_v41 = vld [vmem:[#allocation96_spill] sm:$0xff]  ;;  %v4437_v42 = vld [vmem:[#allocation97_spill] sm:$0xff] }
 0x35f   :  { %1291 = vmatpush1.msra.mxu0 %v4378_v43  ;;  %1362 = vmatpush1.msra.mxu1 %v4379_v44  ;;  %v4438_v43 = vld [vmem:[#allocation98_spill] sm:$0xff]  ;;  %v4439_v44 = vld [vmem:[#allocation99_spill] sm:$0xff] }
 0x360   :  { %1292 = vmatprep.subr.mxu0 %v4380_v45  ;;  %1363 = vmatprep.subr.mxu1 %v4381_v55  ;;  %v4440_v45 = vld [vmem:[#allocation100_spill] sm:$0xff]  ;;  %v4441_v55 = vld [vmem:[#allocation101_spill] sm:$0xff] }
 0x361   :  { %1293 = vmatpush1.msra.mxu0 %v4382_v56  ;;  %1364 = vmatpush1.msra.mxu1 %v4383_v57  ;;  %v4442_v56 = vld [vmem:[#allocation102_spill] sm:$0xff]  ;;  %v4443_v57 = vld [vmem:[#allocation103_spill] sm:$0xff] }
 0x362   :  { %1294 = vmatprep.subr.mxu0 %v4384_v58  ;;  %1365 = vmatprep.subr.mxu1 %v4385_v59  ;;  %v4444_v58 = vld [vmem:[#allocation104_spill] sm:$0xff]  ;;  %v4445_v59 = vld [vmem:[#allocation105_spill] sm:$0xff] }
 0x363   :  { %1295 = vmatpush1.msra.mxu0 %v4386_v61  ;;  %1366 = vmatpush1.msra.mxu1 %v4387_v62  ;;  %v4446_v61 = vld [vmem:[#allocation106_spill] sm:$0xff]  ;;  %v4447_v62 = vld [vmem:[#allocation107_spill] sm:$0xff] }
 0x364   :  { %1296 = vmatprep.subr.mxu0 %v4388_v63  ;;  %1367 = vmatprep.subr.mxu1 %v4389_v46  ;;  %v4448_v63 = vld [vmem:[#allocation108_spill] sm:$0xff]  ;;  %v4449_v46 = vld [vmem:[#allocation109_spill] sm:$0xff] }
 0x365   :  { %1297 = vmatpush1.msra.mxu0 %v4390_v49  ;;  %1368 = vmatpush1.msra.mxu1 %v4391_v48  ;;  %v4450_v49 = vld [vmem:[#allocation110_spill] sm:$0xff]  ;;  %v4451_v48 = vld [vmem:[#allocation111_spill] sm:$0xff] }
 0x366   :  { %1298 = vmatprep.subr.mxu0 %v4392_v50  ;;  %1369 = vmatprep.subr.mxu1 %v4393_v53  ;;  %v4452_v50 = vld [vmem:[#allocation112_spill] sm:$0xff]  ;;  %v4453_v53 = vld [vmem:[#allocation113_spill] sm:$0xff] }
 0x367   :  { %1299 = vmatpush1.msra.mxu0 %v4394_v60  ;;  %1370 = vmatpush1.msra.mxu1 %v4395_v52  ;;  %v4454_v60 = vld [vmem:[#allocation114_spill] sm:$0xff]  ;;  %v4455_v52 = vld [vmem:[#allocation115_spill] sm:$0xff] }
 0x368   :  { %1300 = vmatprep.subr.mxu0 %v4396_v39  ;;  %1371 = vmatprep.subr.mxu1 %v4397_v54  ;;  %v4456_v39 = vld [vmem:[#allocation116_spill] sm:$0xff]  ;;  %v4457_v54 = vld [vmem:[#allocation117_spill] sm:$0xff] }
 0x369   :  { %1301 = vmatpush1.msra.mxu0 %v4398_v47  ;;  %1372 = vmatpush1.msra.mxu1 %v4399_v51  ;;  %v4458_v47 = vld [vmem:[#allocation118_spill] sm:$0xff]  ;;  %v4459_v51 = vld [vmem:[#allocation119_spill] sm:$0xff] }
 0x36a   :  { %1302 = vmatprep.subr.mxu0 %v4400_v2  ;;  %1373 = vmatprep.subr.mxu1 %v4401_v4  ;;  %v4460_v2 = vld [vmem:[#allocation120_spill] sm:$0xff]  ;;  %v4461_v4 = vld [vmem:[#allocation121_spill] sm:$0xff] }
 0x36b   :  { %1303 = vmatpush1.msra.mxu0 %v4402_v3  ;;  %1374 = vmatpush1.msra.mxu1 %v4403_v40  ;;  %v4462_v3 = vld [vmem:[#allocation122_spill] sm:$0xff]  ;;  %v4463_v40 = vld [vmem:[#allocation123_spill] sm:$0xff] }
 0x36c   :  { %1304 = vmatprep.subr.mxu0 %v4404_v6  ;;  %1375 = vmatprep.subr.mxu1 %v4405_v7  ;;  %v4464_v6 = vld [vmem:[#allocation124_spill] sm:$0xff]  ;;  %v4465_v7 = vld [vmem:[#allocation125_spill] sm:$0xff] }
 0x36d   :  { %1305 = vmatpush1.msra.mxu0 %v4406_v8  ;;  %1376 = vmatpush1.msra.mxu1 %v4407_v9  ;;  %v4466_v8 = vld [vmem:[#allocation126_spill] sm:$0xff]  ;;  %v4467_v9 = vld [vmem:[#allocation127_spill] sm:$0xff] }
 0x36e   :  { %1306 = vmatprep.subr.mxu0 %v4408_v10  ;;  %1377 = vmatprep.subr.mxu1 %v4409_v11  ;;  %v4468_v10 = vld [vmem:[#allocation128_spill] sm:$0xff]  ;;  %v4469_v11 = vld [vmem:[#allocation129_spill] sm:$0xff] }
 0x36f   :  { %1307 = vmatpush1.msra.mxu0 %v4410_v12  ;;  %1378 = vmatpush1.msra.mxu1 %v4411_v13  ;;  %v4470_v12 = vld [vmem:[#allocation130_spill] sm:$0xff]  ;;  %v4471_v13 = vld [vmem:[#allocation131_spill] sm:$0xff] }
 0x370   :  { %1308 = vmatprep.subr.mxu0 %v4412_v14  ;;  %1379 = vmatprep.subr.mxu1 %v4413_v15  ;;  %v4472_v14 = vld [vmem:[#allocation132_spill] sm:$0xff]  ;;  %v4473_v15 = vld [vmem:[#allocation133_spill] sm:$0xff] }
 0x371   :  { %1309 = vmatpush2.msra.mxu0 %v4414_v16  ;;  %1380 = vmatpush2.msra.mxu1 %v4415_v17  ;;  %v4474_v16 = vld [vmem:[#allocation134_spill] sm:$0xff] }
 0x372   :  { %1310 = vmatprep.subr.mxu0 %v4416_v18  ;;  %1381 = vmatprep.subr.mxu1 %v4417_v19 }
 0x373   :  { %1311 = vmatpush2.msra.mxu0 %v4418_v20  ;;  %1382 = vmatpush2.msra.mxu1 %v4419_v21 }
 0x374   :  { %1312 = vmatprep.subr.mxu0 %v4420_v22  ;;  %1383 = vmatprep.subr.mxu1 %v4421_v23 }
 0x375   :  { %1313 = vmatpush2.msra.mxu0 %v4422_v24  ;;  %1384 = vmatpush2.msra.mxu1 %v4423_v25 }
 0x376   :  { %1314 = vmatprep.subr.mxu0 %v4424_v26  ;;  %1385 = vmatprep.subr.mxu1 %v4425_v27 }
 0x377   :  { %1315 = vmatpush2.msra.mxu0 %v4426_v28  ;;  %1386 = vmatpush2.msra.mxu1 %v4427_v29 }
 0x378   :  { %1316 = vmatprep.subr.mxu0 %v4428_v30  ;;  %1387 = vmatprep.subr.mxu1 %v4429_v31 }
 0x379   :  { %1317 = vmatpush2.msra.mxu0 %v4430_v32  ;;  %1388 = vmatpush2.msra.mxu1 %v4431_v33 }
 0x37a   :  { %1318 = vmatprep.subr.mxu0 %v4432_v34  ;;  %1389 = vmatprep.subr.mxu1 %v4433_v35 }
 0x37b   :  { %1319 = vmatpush2.msra.mxu0 %v4434_v36  ;;  %1390 = vmatpush2.msra.mxu1 %v4435_v37 }
 0x37c   :  { %1320 = vmatprep.subr.mxu0 %v4436_v41  ;;  %1391 = vmatprep.subr.mxu1 %v4437_v42 }
 0x37d   :  { %1321 = vmatpush2.msra.mxu0 %v4438_v43  ;;  %1392 = vmatpush2.msra.mxu1 %v4439_v44 }
 0x37e   :  { %1322 = vmatprep.subr.mxu0 %v4440_v45  ;;  %1393 = vmatprep.subr.mxu1 %v4441_v55 }
 0x37f   :  { %1323 = vmatpush2.msra.mxu0 %v4442_v56  ;;  %1394 = vmatpush2.msra.mxu1 %v4443_v57 }
 0x380   :  { %1324 = vmatprep.subr.mxu0 %v4444_v58  ;;  %1395 = vmatprep.subr.mxu1 %v4445_v59 }
 0x381   :  { %1325 = vmatpush2.msra.mxu0 %v4446_v61  ;;  %1396 = vmatpush2.msra.mxu1 %v4447_v62 }
 0x382   :  { %1326 = vmatprep.subr.mxu0 %v4448_v63  ;;  %1397 = vmatprep.subr.mxu1 %v4449_v46 }
 0x383   :  { %1327 = vmatpush2.msra.mxu0 %v4450_v49  ;;  %1398 = vmatpush2.msra.mxu1 %v4451_v48 }
 0x384   :  { %1328 = vmatprep.subr.mxu0 %v4452_v50  ;;  %1399 = vmatprep.subr.mxu1 %v4453_v53 }
 0x385   :  { %1329 = vmatpush2.msra.mxu0 %v4454_v60  ;;  %1400 = vmatpush2.msra.mxu1 %v4455_v52 }
 0x386   :  { %1330 = vmatprep.subr.mxu0 %v4456_v39  ;;  %1401 = vmatprep.subr.mxu1 %v4457_v54 }
 0x387   :  { %1331 = vmatpush2.msra.mxu0 %v4458_v47  ;;  %1402 = vmatpush2.msra.mxu1 %v4459_v51 }
 0x388   :  { %1332 = vmatprep.subr.mxu0 %v4460_v2  ;;  %1403 = vmatprep.subr.mxu1 %v4461_v4 }
 0x389   :  { %1333 = vmatpush2.msra.mxu0 %v4462_v3  ;;  %1404 = vmatpush2.msra.mxu1 %v4463_v40 }
 0x38a   :  { %1334 = vmatprep.subr.mxu0 %v4464_v6  ;;  %1405 = vmatprep.subr.mxu1 %v4465_v7 }
 0x38b   :  { %1335 = vmatpush2.msra.mxu0 %v4466_v8  ;;  %1406 = vmatpush2.msra.mxu1 %v4467_v9  ;;  %v3914_v17 = vpop.f32.mrf.mxu0  ;;  %v3922_v20 = vpop.f32.mrf.mxu1 }
 0x38c   :  { %1336 = vmatprep.subr.mxu0 %v4468_v10  ;;  %1407 = vmatprep.subr.mxu1 %v4469_v11  ;;  %v1110_v24 = vmul.f32 %v3922_v20, %v3922_v20  ;;  %v1093_v27 = vsel %vm1089_vm2, %v3922_v20, 0.0 }
 0x38d   :  { %1337 = vmatpush2.msra.mxu0 %v4470_v12  ;;  %1408 = vmatpush2.msra.mxu1 %v4471_v13  ;;  %v3916_v18 = vpop.f32.mrf.mxu0  ;;  %v3932_v26 = vpop.f32.mrf.mxu1 }
 0x38e   :  { %1338 = vmatprep.subr.mxu0 %v3450_v1  ;;  %1409 = vmatprep.subr.mxu1 %v4472_v14  ;;  %v1108_v1 = vmul.f32 %v3914_v17, %v3914_v17  ;;  %v1109_v19 = vmul.f32 %v3916_v18, %v3916_v18  ;;  %v1091_v21 = vsel %vm1089_vm2, %v3916_v18, 0.0  ;;  %v1119_v29 = vsel %vm1089_vm2, %v1110_v24, 0.0 }
 0x38f   :  { %1339 = vmatpush2.msra.mxu0 %v4473_v15  ;;  %1410 = vmatpush2.msra.mxu1 %v4474_v16  ;;  %v1111_v30 = vmul.f32 %v3932_v26, %v3932_v26  ;;  %v1095_v32 = vsel %vm1089_vm2, %v3932_v26, 0.0 }
 0x390   :  { %1341 = vmatmul.mubr.f32.vlgmr.msra.gmra.mxu0 %v3772_v5  ;;  %1412 = vmatmul.mubr.f32.vlgmr.msra.gmra.mxu1 %v3772_v5  ;;  %v1090_v5 = vsel %vm1089_vm2, %v3914_v17, 0.0  ;;  %v1116_v22 = vsel %vm1089_vm2, %v1108_v1, 0.0  ;;  %v1117_v23 = vsel %vm1089_vm2, %v1109_v19, 0.0 }
 0x391   :  { %1482 = vmatprep.mubr.f32.mxu0 %v4341_v38  ;;  %1553 = vmatprep.mubr.f32.mxu1 %v4341_v38  ;;  %v1092_v25 = vadd.f32 %v1091_v21, %v1090_v5  ;;  %v1118_v28 = vadd.f32 %v1117_v23, %v1116_v22  ;;  %v1121_v34 = vsel %vm1089_vm2, %v1111_v30, 0.0 }
 0x393   :  { %v1094_v31 = vadd.f32 %v1093_v27, %v1092_v25  ;;  %v1120_v33 = vadd.f32 %v1119_v29, %v1118_v28 }
 0x395   :  { %v1096_v35 = vadd.f32 %v1095_v32, %v1094_v31  ;;  %v1122_v36 = vadd.f32 %v1121_v34, %v1120_v33 }
 0x3cc   :  { %v3942_v37 = vpop.f32.mrf.mxu0  ;;  %v3944_v41 = vpop.f32.mrf.mxu1 }
 0x3cd   :  { %v1097_v42 = vsel %vm1089_vm2, %v3942_v37, 0.0  ;;  %v1112_v43 = vmul.f32 %v3942_v37, %v3942_v37  ;;  %v1114_v44 = vmul.f32 %v3944_v41, %v3944_v41  ;;  %v1101_v61 = vsel %vm1089_vm2, %v3944_v41, 0.0 }
 0x3ce   :  { %v1098_v45 = vadd.f32 %v1097_v42, %v1096_v35  ;;  %v3952_v55 = vpop.f32.mrf.mxu0  ;;  %v3954_v56 = vpop.f32.mrf.mxu1 }
 0x3cf   :  { %v1123_v57 = vsel %vm1089_vm2, %v1112_v43, 0.0  ;;  %v1099_v58 = vsel %vm1089_vm2, %v3952_v55, 0.0  ;;  %v1113_v59 = vmul.f32 %v3952_v55, %v3952_v55  ;;  %v1115_v49 = vmul.f32 %v3954_v56, %v3954_v56 }
 0x3d0   :  { %v1124_v62 = vadd.f32 %v1123_v57, %v1122_v36  ;;  %v1100_v63 = vadd.f32 %v1099_v58, %v1098_v45  ;;  %v1103_v48 = vsel %vm1089_vm2, %v3954_v56, 0.0  ;;  %v1127_v50 = vsel %vm1089_vm2, %v1114_v44, 0.0 }
 0x3d1   :  { %v1125_v46 = vsel %vm1089_vm2, %v1113_v59, 0.0  ;;  %v1129_v54 = vsel %vm1089_vm2, %v1115_v49, 0.0 }
 0x3d2   :  { %v1102_v53 = vadd.f32 %v1101_v61, %v1100_v63  ;;  %v1126_v60 = vadd.f32 %v1125_v46, %v1124_v62 }
 0x3d4   :  { %v1104_v52 = vadd.f32 %v1103_v48, %v1102_v53  ;;  %v1128_v39 = vadd.f32 %v1127_v50, %v1126_v60 }
 0x3d6   :  { %1105 = vadd.xlane.f32.xlu0 %v1104_v52  ;;  %v1130_v47 = vadd.f32 %v1129_v54, %v1128_v39 }
 0x3da   :  { %1131 = vadd.xlane.f32.xlu0 %v1130_v47 }
 0x40e   :  { %v1200_v51 = vpop.f32.mrf.mxu0  ;;  %v1271_v2 = vpop.f32.mrf.mxu1 }
 0x410   :  { %v1202_v4 = vpop.f32.mrf.mxu0  ;;  %v1273_v3 = vpop.f32.mrf.mxu1 }
 0x411   :  { %1448 = vmatprep.subr.mxu0 %v1202_v4  ;;  %1519 = vmatprep.subr.mxu1 %v1273_v3 }
 0x412   :  { %1449 = vmatpush1.msra.mxu0 %v1200_v51  ;;  %1520 = vmatpush1.msra.mxu1 %v1271_v2 }
 0x413   :  { %1867 = vmatmul.mubr.msk.f32.vlgmr.msra.gmra.mxu0 %vm801_vm1, %v3482_v0  ;;  %1868 = vmatmul.mubr.msk.f32.vlgmr.msra.gmra.mxu1 %vm801_vm1, %v3482_v0 }
 0x414   :  { %1624 = vmatprep.mubr.f32.mxu0 %v4341_v38  ;;  %1695 = vmatprep.mubr.f32.mxu1 %v4341_v38 }
 0x450   :  { %v1342_v40 = vpop.f32.mrf.mxu0  ;;  %v1413_v6 = vpop.f32.mrf.mxu1 }
 0x452   :  { %v1344_v7 = vpop.f32.mrf.mxu0  ;;  %v1415_v8 = vpop.f32.mrf.mxu1 }
 0x453   :  { %1590 = vmatprep.subr.mxu0 %v1344_v7  ;;  %1661 = vmatprep.subr.mxu1 %v1415_v8 }
 0x454   :  { %1591 = vmatpush1.msra.mxu0 %v1342_v40  ;;  %1662 = vmatpush1.msra.mxu1 %v1413_v6 }
 0x455   :  { %1869 = vmatmul.mubr.msk.f32.vlgmr.msra.gmra.mxu0 %vm801_vm1, %v3482_v0  ;;  %1870 = vmatmul.mubr.msk.f32.vlgmr.msra.gmra.mxu1 %vm801_vm1, %v3482_v0 }
 0x45f   :  { %v1106_v54 = vpop.xlane.xlu0 %1105 }
 0x463   :  { %v1132_v47 = vpop.xlane.xlu0 %1131 }
 0x4d3   :  { %v3980_v9 = vpop.f32.mrf.mxu0  ;;  %v3988_v12 = vpop.f32.mrf.mxu1 }
 0x4d4   :  { %v1720_v38 = vmul.f32 %v3980_v9, %v3980_v9  ;;  %v1702_v13 = vsel %vm1089_vm2, %v3980_v9, 0.0  ;;  %v1722_v16 = vmul.f32 %v3988_v12, %v3988_v12  ;;  %v1705_v5 = vsel %vm1089_vm2, %v3988_v12, 0.0 }
 0x4d5   :  { %v3982_v10 = vpop.f32.mrf.mxu0  ;;  %v3998_v19 = vpop.f32.mrf.mxu1 }
 0x4d6   :  { %v1721_v11 = vmul.f32 %v3982_v10, %v3982_v10  ;;  %v1703_v14 = vsel %vm1089_vm2, %v3982_v10, 0.0  ;;  %v1728_v0 = vsel %vm1089_vm2, %v1720_v38, 0.0  ;;  %v1731_v22 = vsel %vm1089_vm2, %v1722_v16, 0.0 }
 0x4d7   :  { %v1704_v1 = vadd.f32 %v1703_v14, %v1702_v13  ;;  %v1723_v23 = vmul.f32 %v3998_v19, %v3998_v19  ;;  %v1707_v25 = vsel %vm1089_vm2, %v3998_v19, 0.0 }
 0x4d8   :  { %v1729_v15 = vsel %vm1089_vm2, %v1721_v11, 0.0  ;;  %v1751_v11 = vld [vmem:[%s4070_s6] sm:$0xf] }
 0x4d9   :  { %v1730_v21 = vadd.f32 %v1729_v15, %v1728_v0  ;;  %v1706_v24 = vadd.f32 %v1705_v5, %v1704_v1  ;;  %v1733_v28 = vsel %vm1089_vm2, %v1723_v23, 0.0  ;;  %v1755_v0 = vld [vmem:[%s4071_s7] sm:$0xf] }
 0x4db   :  { %v1732_v27 = vadd.f32 %v1731_v22, %v1730_v21  ;;  %v1708_v29 = vadd.f32 %v1707_v25, %v1706_v24 }
 0x4dd   :  { %v1734_v35 = vadd.f32 %v1733_v28, %v1732_v27 }
 0x515   :  { %v1626_v30 = vpop.f32.mrf.mxu0  ;;  %v4008_v31 = vpop.f32.mrf.mxu1 }
 0x516   :  { %v1709_v32 = vsel %vm1089_vm2, %v1626_v30, 0.0  ;;  %v1724_v33 = vmul.f32 %v1626_v30, %v1626_v30  ;;  %v1726_v34 = vmul.f32 %v4008_v31, %v4008_v31  ;;  %v1713_v58 = vsel %vm1089_vm2, %v4008_v31, 0.0 }
 0x517   :  { %v1710_v36 = vadd.f32 %v1709_v32, %v1708_v29  ;;  %v1628_v42 = vpop.f32.mrf.mxu0  ;;  %v1699_v43 = vpop.f32.mrf.mxu1 }
 0x518   :  { %v1735_v44 = vsel %vm1089_vm2, %v1724_v33, 0.0  ;;  %v1711_v45 = vsel %vm1089_vm2, %v1628_v42, 0.0  ;;  %v1725_v57 = vmul.f32 %v1628_v42, %v1628_v42  ;;  %v1727_v63 = vmul.f32 %v1699_v43, %v1699_v43 }
 0x519   :  { %v1736_v59 = vadd.f32 %v1735_v44, %v1734_v35  ;;  %v1712_v61 = vadd.f32 %v1711_v45, %v1710_v36  ;;  %v1739_v46 = vsel %vm1089_vm2, %v1726_v34, 0.0  ;;  %v1715_v50 = vsel %vm1089_vm2, %v1699_v43, 0.0 }
 0x51a   :  { %v1737_v62 = vsel %vm1089_vm2, %v1725_v57, 0.0  ;;  %v1741_v52 = vsel %vm1089_vm2, %v1727_v63, 0.0 }
 0x51b   :  { %v1738_v49 = vadd.f32 %v1737_v62, %v1736_v59  ;;  %v1714_v48 = vadd.f32 %v1713_v58, %v1712_v61 }
 0x51d   :  { %v1716_v53 = vadd.f32 %v1715_v50, %v1714_v48  ;;  %v1740_v60 = vadd.f32 %v1739_v46, %v1738_v49 }
 0x51f   :  { %1717 = vadd.xlane.f32.xlu1 %v1716_v53  ;;  %v1742_v39 = vadd.f32 %v1741_v52, %v1740_v60 }
 0x521   :  { %1743 = vadd.xlane.f32.xlu0 %v1742_v39 }
 0x5a8   :  { %v1718_v51 = vpop.xlane.xlu1 %1717 }
 0x5a9   :  { %v1719_v2 = vadd.f32 %v1718_v51, %v1106_v54 }
 0x5aa   :  { %v1744_v4 = vpop.xlane.xlu0 %1743 }
 0x5ab   :  { %v1747_v3 = vmul.f32 0.00048828125, %v1719_v2  ;;  %v1745_v40 = vadd.f32 %v1744_v4, %v1132_v47 }
 0x5ad   :  { %v1749_v6 = vmul.f32 %v1747_v3, %v1747_v3  ;;  %v1748_v7 = vmul.f32 0.00048828125, %v1745_v40 }
 0x5af   :  { %v1750_v8 = vsub.f32 %v1748_v7, %v1749_v6 }
 0x5b1   :  { %v1752_v38 = vadd.f32 1e-05, %v1750_v8 }
 0x5b3   :  { %1881 = vrsqrt.f32 %v1752_v38 }
 0x5c0   :  { %v1882_v13 = vpop.eup %1881 }
 0x5c1   :  { %v1754_v14 = vmul.f32 %v1882_v13, %v1751_v11 }
 0x5c3   :  { %1760 = vperm.xlu0 %1878, %v1754_v14   ;;  %v1756_v15 = vmul.f32 %v1754_v14, %v1747_v3 }
 0x5c5   :  { %v1757_v16 = vsub.f32 %v1755_v0, %v1756_v15 }
 0x5c7   :  { %1773 = vperm.xlu1 %1877, %v1757_v16  }
 0x63e   :  { %v1761_v1 = vpop.permute.xlu0 %1760 }
 0x63f   :  { %v1763_v5 = vmul.f32 %v1761_v1, %v3914_v17  ;;  %v1764_v21 = vmul.f32 %v1761_v1, %v3916_v18  ;;  %v1765_v22 = vmul.f32 %v1761_v1, %v3922_v20  ;;  %v1766_v23 = vmul.f32 %v1761_v1, %v3932_v26 }
 0x640   :  { %v1767_v24 = vmul.f32 %v1761_v1, %v3942_v37  ;;  %v1768_v25 = vmul.f32 %v1761_v1, %v3952_v55  ;;  %v1769_v27 = vmul.f32 %v1761_v1, %v3944_v41  ;;  %v1770_v28 = vmul.f32 %v1761_v1, %v3954_v56 }
 0x641   :  { %v1812_v29 = vmul.f32 %v1761_v1, %v3980_v9  ;;  %v1813_v32 = vmul.f32 %v1761_v1, %v3982_v10  ;;  %v1814_v17 = vmul.f32 %v1761_v1, %v3988_v12  ;;  %v1815_v18 = vmul.f32 %v1761_v1, %v3998_v19 }
 0x642   :  { %v1816_v33 = vmul.f32 %v1761_v1, %v1626_v30  ;;  %v1817_v20 = vmul.f32 %v1761_v1, %v1628_v42  ;;  %v1818_v26 = vmul.f32 %v1761_v1, %v4008_v31  ;;  %v1819_v34 = vmul.f32 %v1761_v1, %v1699_v43  ;;  %v1774_v37 = vpop.permute.xlu1 %1773 }
 0x643   :  { %v1776_v35 = vadd.f32 %v1774_v37, %v1763_v5  ;;  %v1777_v55 = vadd.f32 %v1774_v37, %v1764_v21  ;;  %v1778_v36 = vadd.f32 %v1774_v37, %v1765_v22  ;;  %v1779_v41 = vadd.f32 %v1774_v37, %v1766_v23 }
 0x644   :  { %v1780_v44 = vadd.f32 %v1774_v37, %v1767_v24  ;;  %v1781_v56 = vadd.f32 %v1774_v37, %v1768_v25  ;;  %v1782_v45 = vadd.f32 %v1774_v37, %v1769_v27  ;;  %v1783_v9 = vadd.f32 %v1774_v37, %v1770_v28 }
 0x645   :  { %v1784_v57 = vmax.f32 %v1776_v35, 0.0  ;;  %v1785_v10 = vmax.f32 %v1777_v55, 0.0  ;;  %v1786_v58 = vmax.f32 %v1778_v36, 0.0  ;;  %v1787_v12 = vmax.f32 %v1779_v41, 0.0 }
 0x646   :  { %v1788_v59 = vmax.f32 %v1780_v44, 0.0  ;;  %v1789_v19 = vmax.f32 %v1781_v56, 0.0  ;;  %v1790_v30 = vmax.f32 %v1782_v45, 0.0  ;;  %v1791_v42 = vmax.f32 %v1783_v9, 0.0 }
 0x647   :  { %v1800_v61 = vcombine.low %v1784_v57, %v1785_v10  ;;  %v1801_v31 = vcombine.low %v1786_v58, %v1787_v12  ;;  %v1820_v43 = vadd.f32 %v1812_v29, %v1774_v37  ;;  %v1821_v62 = vadd.f32 %v1813_v32, %v1774_v37 }
 0x648   :  { %v1802_v63 = vcombine.low %v1788_v59, %v1789_v19  ;;  %v1803_v46 = vcombine.low %v1790_v30, %v1791_v42  ;;  %v1822_v49 = vadd.f32 %v1814_v17, %v1774_v37  ;;  %v1823_v48 = vadd.f32 %v1815_v18, %v1774_v37 }
 0x649   :  { %1808 = vst [vmem:[%s4072_s8] sm:$0xff] %v1800_v61  ;;  %1809 = vst [vmem:[%s4072_s8 + $0x8] sm:$0xff] %v1801_v31  ;;  %v1824_v50 = vadd.f32 %v1816_v33, %v1774_v37  ;;  %v1825_v53 = vadd.f32 %v1817_v20, %v1774_v37  ;;  %v1826_v60 = vadd.f32 %v1818_v26, %v1774_v37  ;;  %v1828_v39 = vmax.f32 %v1820_v43, 0.0 }
 0x64a   :  { %v1827_v52 = vadd.f32 %v1819_v34, %v1774_v37  ;;  %1810 = vst [vmem:[%s4072_s8 + $0x10] sm:$0xff] %v1802_v63  ;;  %1811 = vst [vmem:[%s4072_s8 + $0x18] sm:$0xff] %v1803_v46  ;;  %v1829_v54 = vmax.f32 %v1821_v62, 0.0  ;;  %v1830_v47 = vmax.f32 %v1822_v49, 0.0  ;;  %v1831_v51 = vmax.f32 %v1823_v48, 0.0 }
 0x64b   :  { %v1832_v2 = vmax.f32 %v1824_v50, 0.0  ;;  %v1833_v4 = vmax.f32 %v1825_v53, 0.0  ;;  %v1834_v3 = vmax.f32 %v1826_v60, 0.0 }
 0x64c   :  { %v1835_v40 = vmax.f32 %v1827_v52, 0.0  ;;  %v1844_v6 = vcombine.low %v1828_v39, %v1829_v54  ;;  %v1845_v7 = vcombine.low %v1830_v47, %v1831_v51 }
 0x64d   :  { %v1846_v8 = vcombine.low %v1832_v2, %v1833_v4 }
 0x64e   :  { %v1847_v38 = vcombine.low %v1834_v3, %v1835_v40  ;;  %1871 = vst [vmem:[%s4072_s8 + $0x20] sm:$0xff] %v1844_v6  ;;  %1872 = vst [vmem:[%s4072_s8 + $0x28] sm:$0xff] %v1845_v7 }
 0x64f   :  { %1873 = vst [vmem:[%s4072_s8 + $0x30] sm:$0xff] %v1846_v8 }
 0x650   :  { %1874 = vst [vmem:[%s4072_s8 + $0x38] sm:$0xff] %v1847_v38 }

</bundles_post_ra>
